<compile_context>
chip_gen: v6e
topology: v6e:2x2x1
jax: 0.10.0
libtpu: 0.0.40
codegen_flags: <defaults>
</compile_context>

<pallas_src>
import functools
import math

import jax
import jax.numpy as jnp
from jax import lax
from jax.experimental import pallas as pl
from jax.experimental.pallas import tpu as pltpu


def _rup(n, m=128):
    return ((n + m - 1) // m) * m


def _lcrnn_kernel(EP, HP, mxu_dtype, temp_ref, act_ref, pd_ref, w_ref, out_ref):
    """Fused depth-1 left-corner RNN cell step.

    temp_ref : (1,)  f32 SMEM   1/temperature (runtime value, no retrace)
    act_ref  : (TB, EP+4*HP+128) f32 = [x | pb0 | pa1 | pb1 | pa0 | gumbel]
               (every segment 128-lane aligned, zero padded)
    pd_ref   : (TB, 1) i32      previous depth counter
    w_ref    : (EP+3*HP, 6*HP+128) mxu_dtype  packed / composed weights
    out_ref  : (TB, 2*HP+128) f32 = [na1 | nb1 | depth,f,j | 0-pad]
    """
    f32 = jnp.float32
    KP = EP + 3 * HP

    act = act_ref[...]
    pd = pd_ref[...]                                  # (TB, 1) int32
    inv_temp = temp_ref[0]

    xin = act[:, :KP]                                 # [x | pb0 | pa1 | pb1]
    pa1 = act[:, EP + HP:EP + 2 * HP]
    pb1 = act[:, EP + 2 * HP:EP + 3 * HP]
    pa0 = act[:, KP:KP + HP]
    gum = act[:, KP + HP:KP + HP + 4]

    # ---- single fused MXU matmul: every linear term of the cell ------------
    z = jnp.dot(xin.astype(mxu_dtype), w_ref[...],
                preferred_element_type=f32)           # (TB, 6*HP+128)

    nnj_a = z[:, 0 * HP:1 * HP]       # w_a00(cat(x, pb0, pa1))
    fnj_a = z[:, 1 * HP:2 * HP]       # w_a10(cat(x, pb0))
    fj_b = z[:, 2 * HP:3 * HP]        # w_b11(cat(x, pb1))
    b00c = z[:, 3 * HP:4 * HP]        # w_b00(cat(x, pa1, nnj_a))  (composed)
    b10c = z[:, 4 * HP:5 * HP]        # w_b10(cat(x, fnj_a))       (composed)
    nfj_b = z[:, 5 * HP:6 * HP]       # w_b01(cat(x, pb0, pa1))
    a0 = 6 * HP
    att_eq_dp = z[:, a0 + 0:a0 + 4]   # attention composites by coefficient
    att_ge_d = z[:, a0 + 4:a0 + 8]    # (gt_dp and ge_d merged: same predicate)
    att_eq_d = z[:, a0 + 8:a0 + 12]
    att_gt_d = z[:, a0 + 12:a0 + 16]

    # ---- depth indicators (exact int comparisons, depth d == 1) ------------
    TB = act.shape[0]
    hshape = (TB, HP)
    eq_d = (pd == 1).astype(f32)
    gt_d = (pd > 1).astype(f32)
    ge_d = (pd >= 1).astype(f32)                      # == gt_dp (pd + 1 > 1)
    eq_dp = (pd == 0).astype(f32)                     # prev_depth + 1 == d
    eq_dm = (pd == 2).astype(f32)                     # prev_depth - 1 == d
    gt_dm = (pd > 2).astype(f32)                      # prev_depth - 1 >  d
    # Hoist each (TB,1)->(TB,HP) broadcast exactly once (JAX does not CSE them).
    eq_d_h = jnp.broadcast_to(eq_d, hshape)
    gt_d_h = jnp.broadcast_to(gt_d, hshape)
    ge_d_h = jnp.broadcast_to(ge_d, hshape)
    eq_dp_h = jnp.broadcast_to(eq_dp, hshape)
    eq_dm_h = jnp.broadcast_to(eq_dm, hshape)
    gt_dm_h = jnp.broadcast_to(gt_dm, hshape)

    # ---- blended candidate states (lt-branch contributes zeros) ------------
    na00 = eq_d_h * nnj_a + gt_d_h * pa1
    na11 = ge_d_h * pa1                               # fork_join_a == pa1
    na10 = eq_dp_h * fnj_a + ge_d_h * pa1
    na01 = eq_dm_h * pa0 + gt_dm_h * pa1              # nofork_join_a == pa0

    nb00 = eq_d_h * b00c + gt_d_h * pb1
    nb11 = eq_d_h * fj_b + gt_d_h * pb1
    nb10 = eq_dp_h * b10c + ge_d_h * pb1
    nb01 = eq_dm_h * nfj_b + gt_dm_h * pb1

    # ---- attention logits (pre-composed into the big dot) -------------------
    att = (eq_dp * att_eq_dp + ge_d * att_ge_d +
           eq_d * att_eq_d + gt_d * att_gt_d)         # (TB, 4)

    # RelaxedOneHotCategorical(temp, probs=softmax(sigmoid(att))).sample()
    # == softmax((log_softmax(sigmoid(att)) + gumbel) * (1/temp))
    logits = jax.nn.sigmoid(att)
    lmax = jnp.max(logits, axis=1, keepdims=True)
    lse = lmax + jnp.log(jnp.sum(jnp.exp(logits - lmax), axis=1, keepdims=True))
    scores = (logits - lse + gum) * inv_temp
    smax = jnp.max(scores, axis=1, keepdims=True)
    es = jnp.exp(scores - smax)
    sample = es / jnp.sum(es, axis=1, keepdims=True)

    # ---- legality mask + L2 normalize (F.normalize, p=2, eps=1e-12) --------
    not0 = (pd != 0).astype(f32)
    not1 = (pd != 1).astype(f32)
    av0 = not0 * sample[:, 0:1]
    av1 = not0 * not1 * sample[:, 1:2]
    av2 = not1 * sample[:, 2:3]
    av3 = not0 * sample[:, 3:4]
    nsq = av0 * av0 + av1 * av1 + av2 * av2 + av3 * av3
    inv_norm = lax.rsqrt(jnp.maximum(nsq, 1e-24))     # == 1 / max(||v||_2, 1e-12)
    s0 = av0 * inv_norm
    s1 = av1 * inv_norm
    s2 = av2 * inv_norm
    s3 = av3 * inv_norm

    # hidden = sum_k sel_k * ab_k  (the striper/expander/bmm reduction)
    s0h = jnp.broadcast_to(s0, hshape)
    s1h = jnp.broadcast_to(s1, hshape)
    s2h = jnp.broadcast_to(s2, hshape)
    s3h = jnp.broadcast_to(s3, hshape)
    na1 = s0h * na00 + s1h * na01 + s2h * na10 + s3h * na11
    nb1 = s0h * nb00 + s1h * nb01 + s2h * nb10 + s3h * nb11

    # next_depth mirrors the reference's .long() truncation of the (>=0)
    # normalized selection weights.
    # TODO(synk): the reference's truncation is likely degenerate at temp>0;
    # kept as-is to preserve forward semantics.
    pdf = pd.astype(f32)
    ndf = (jnp.floor(s0) * pdf + jnp.floor(s1) * (pdf - 1.0) +
           jnp.floor(s2) * (pdf + 1.0) + jnp.floor(s3) * pdf)
    f_val = s2 + s3
    j_val = s1 + s3

    # ---- ONE assembled, unmasked, lane-dense full-width store ---------------
    scal = jnp.concatenate(
        [ndf, f_val, j_val, jnp.zeros((TB, 125), f32)], axis=1)   # (TB, 128)
    out_ref[...] = jnp.concatenate([na1, nb1, scal], axis=1)


class LcRnnCellPallas:
    """Depth-1 left-corner RNN cell; forward pass in one fused Pallas kernel."""

    def __init__(self, input_size, hidden_size=100, key=None,
                 mxu_dtype=jnp.bfloat16):
        if key is None:
            key = jax.random.PRNGKey(42)
        self.E = E = input_size
        self.H = H = hidden_size
        self.depth = 1
        self.mxu_dtype = mxu_dtype   # bf16 default: native MXU rate everywhere

        self.EP = EP = _rup(E)
        self.HP = HP = _rup(H)
        self.K_pad = EP + 3 * HP              # aligned matmul contraction width
        self.NW_pad = 6 * HP + 128            # aligned matmul output width
        self.ACT_W = EP + 4 * HP + 128        # aligned activation width
        self.OUT_W = 2 * HP + 128             # aligned output width

        def linear_T(k, in_f, out_f):
            bound = 1.0 / math.sqrt(in_f)
            w = jax.random.uniform(k, (out_f, in_f), jnp.float32, -bound, bound)
            return w.T                        # (in_f, out_f): y = x @ w

        ks = jax.random.split(key, 7)
        wa00 = linear_T(ks[0], E + 2 * H, H)  # cat(x, pb0, pa1)
        wa10 = linear_T(ks[1], E + H, H)      # cat(x, pb0)
        wb00 = linear_T(ks[2], E + 2 * H, H)  # cat(x, pa1, next_a_00)
        wb11 = linear_T(ks[3], E + H, H)      # cat(x, pb1)
        wb10 = linear_T(ks[4], E + H, H)      # cat(x, next_a_10)
        wb01 = linear_T(ks[5], E + 2 * H, H)  # cat(x, pb0, pa1)
        watt = linear_T(ks[6], 8 * H, 4)      # attention over (B, 8H)

        wa00x, wa00pb, wa00pa = wa00[:E], wa00[E:E + H], wa00[E + H:]
        wa10x, wa10pb = wa10[:E], wa10[E:]
        wb00x, wb00pa, wb00na = wb00[:E], wb00[E:E + H], wb00[E + H:]
        wb11x, wb11pb = wb11[:E], wb11[E:]
        wb10x, wb10na = wb10[:E], wb10[E:]
        wb01x, wb01pb, wb01pa = wb01[:E], wb01[E:E + H], wb01[E + H:]
        # attention blocks hitting the non-zero slabs of next_state_flat[:, 8H:]
        aa10, ab10 = watt[2 * H:3 * H], watt[3 * H:4 * H]
        aa11, ab11 = watt[6 * H:7 * H], watt[7 * H:8 * H]

        def kslab(xb=None, pb0b=None, pa1b=None, pb1b=None, width=H):
            rows = ((xb, E), (pb0b, H), (pa1b, H), (pb1b, H))
            return jnp.concatenate(
                [b if b is not None else jnp.zeros((r, width), jnp.float32)
                 for b, r in rows], axis=0)

        # Unpadded (K, H) column blocks over rows [x | pb0 | pa1 | pb1]; the
        # depth blends are distributed through the Linears, so the chained
        # matmuls (w_b00 on next_a_00, w_b10 on next_a_10, attention on the
        # blended states) become *composed* weight columns of ONE matmul.
        u_nnj_a = kslab(xb=wa00x, pb0b=wa00pb, pa1b=wa00pa)
        u_fnj_a = kslab(xb=wa10x, pb0b=wa10pb)
        u_fj_b = kslab(xb=wb11x, pb1b=wb11pb)
        u_b00c = kslab(xb=wb00x + wa00x @ wb00na,
                       pb0b=wa00pb @ wb00na,
                       pa1b=wb00pa + wa00pa @ wb00na)
        u_b10c = kslab(xb=wb10x + wa10x @ wb10na,
                       pb0b=wa10pb @ wb10na)
        u_nfj_b = kslab(xb=wb01x, pb0b=wb01pb, pa1b=wb01pa)

        # Attention composites grouped by depth-indicator coefficient.
        # gt_dp (pd+1 > 1) == ge_d (pd >= 1)  ->  merge their two groups.
        a_eq_dp = u_fnj_a @ aa10 + u_b10c @ ab10
        a_gedp = kslab(pa1b=aa10 + aa11, pb1b=ab10, width=4)
        a_eq_d = u_fj_b @ ab11
        a_gt_d = kslab(pb1b=ab11, width=4)
        att_block = jnp.concatenate([a_eq_dp, a_gedp, a_eq_d, a_gt_d], axis=1)

        def expand(blk, cpad):
            # Pad columns to `cpad` and insert zero rows so each input segment
            # (x, pb0, pa1, pb1) starts at a 128-aligned row offset.
            blk = jnp.pad(blk, ((0, 0), (0, cpad - blk.shape[1])))
            bx, bp0, bp1, bp2 = (blk[:E], blk[E:E + H],
                                 blk[E + H:E + 2 * H], blk[E + 2 * H:])
            ze = jnp.zeros((EP - E, cpad), jnp.float32)
            zh = jnp.zeros((HP - H, cpad), jnp.float32)
            return jnp.concatenate([bx, ze, bp0, zh, bp1, zh, bp2, zh], axis=0)

        w_packed = jnp.concatenate(
            [expand(u_nnj_a, HP), expand(u_fnj_a, HP), expand(u_fj_b, HP),
             expand(u_b00c, HP), expand(u_b10c, HP), expand(u_nfj_b, HP),
             expand(att_block, 128)], axis=1)          # (K_pad, NW_pad)
        self.w_packed = w_packed.astype(mxu_dtype)

    def __call__(self, X, hidden, key, temp=1.0):
        prev_a, prev_b, prev_depth, _ = hidden
        f32 = jnp.float32
        B = X.shape[0]
        H, EP, HP = self.H, self.EP, self.HP

        # Gumbel noise for the RelaxedOneHotCategorical sample (glue RNG).
        u = jax.random.uniform(key, (B, 4), f32, 1e-10, 1.0)
        gumbel = -jnp.log(-jnp.log(u))

        pa = prev_a.astype(f32)
        pb = prev_b.astype(f32)

        def padc(a, w):
            return jnp.pad(a, ((0, 0), (0, w - a.shape[1])))

        # 128-lane aligned activation packing: [x | pb0 | pa1 | pb1 | pa0 | gum]
        act = jnp.concatenate(
            [padc(X.astype(f32), EP), padc(pb[:, 0, :], HP),
             padc(pa[:, 1, :], HP), padc(pb[:, 1, :], HP),
             padc(pa[:, 0, :], HP), padc(gumbel, 128)], axis=-1)
        pd = prev_depth.astype(jnp.int32).reshape(B, 1)

        # 1-D grid over the batch; tile up to 256 rows (fills 256-row MXU).
        B8 = ((B + 7) // 8) * 8
        TB = B8 if B8 <= 256 else 256
        Bp = ((B + TB - 1) // TB) * TB
        if Bp != B:
            act = jnp.pad(act, ((0, Bp - B), (0, 0)))
            pd = jnp.pad(pd, ((0, Bp - B), (0, 0)))

        # Runtime temperature (SMEM scalar) -> no retrace/recompile on anneal.
        inv_temp = jnp.reshape(jnp.asarray(1.0 / temp, f32), (1,))

        kernel = functools.partial(_lcrnn_kernel, EP, HP, self.mxu_dtype)
        out = pl.pallas_call(
            kernel,
            out_shape=jax.ShapeDtypeStruct((Bp, self.OUT_W), f32),
            grid=(Bp // TB,),
            in_specs=[
                pl.BlockSpec(memory_space=pltpu.MemorySpace.SMEM),   # 1/temp
                pl.BlockSpec((TB, self.ACT_W), lambda i: (i, 0)),
                pl.BlockSpec((TB, 1), lambda i: (i, 0)),
                pl.BlockSpec((self.K_pad, self.NW_pad), lambda i: (0, 0)),
            ],
            out_specs=pl.BlockSpec((TB, self.OUT_W), lambda i: (i, 0)),
            compiler_params=pltpu.CompilerParams(
                dimension_semantics=("parallel",)),
        )(inv_temp, act, pd, self.w_packed)

        # Split the lane-dense slab back into the module's output structure.
        out = out[:B]
        na1 = out[:, :H]
        nb1 = out[:, HP:HP + H]
        zero_row = jnp.zeros((B, 1, H), f32)
        next_a = jnp.concatenate([zero_row, na1[:, None, :]], axis=1)
        next_b = jnp.concatenate([zero_row, nb1[:, None, :]], axis=1)
        c = 2 * HP
        next_depth = out[:, c:c + 1].astype(jnp.int32)
        f = out[:, c + 1:c + 2]
        j = out[:, c + 2:c + 3]
        return next_a, next_b, next_depth, (f, j)


if __name__ == "__main__":
    B, E, H = 4, 16, 32
    root = jax.random.PRNGKey(0)
    kw, kx, ka, kb, kd, ksamp = jax.random.split(root, 6)

    cell = LcRnnCellPallas(input_size=E, hidden_size=H, key=kw)

    X = jax.random.normal(kx, (B, E), jnp.float32)
    prev_a = jax.random.normal(ka, (B, 2, H), jnp.float32)
    prev_b = jax.random.normal(kb, (B, 2, H), jnp.float32)
    prev_depth = jax.random.randint(kd, (B, 1), 0, 2, jnp.int32)

    hidden = (prev_a, prev_b, prev_depth, None)
    next_a, next_b, next_depth, (f, j) = cell(X, hidden, ksamp, temp=1.0)

    jax.block_until_ready((next_a, next_b, next_depth, f, j))
    assert next_a.shape == (B, 2, H) and next_b.shape == (B, 2, H)
    assert next_depth.shape == (B, 1) and f.shape == (B, 1) and j.shape == (B, 1)
    assert bool(jnp.all(jnp.isfinite(next_a))) and bool(jnp.all(jnp.isfinite(next_b)))
    assert bool(jnp.all(jnp.isfinite(f))) and bool(jnp.all(jnp.isfinite(j)))
    print("KERNEL_OK")
</pallas_src>

<mosaic_0001>
module attributes {stable_mosaic.version = 11 : i64} {
  func.func @_lcrnn_kernel(%arg0: i32, %arg1: memref<1xf32, #tpu.memory_space<smem>>, %arg2: memref<8x768xf32, #tpu.memory_space<vmem>>, %arg3: memref<8x1xi32, #tpu.memory_space<vmem>>, %arg4: memref<512x896xbf16, #tpu.memory_space<vmem>>, %arg5: memref<8x384xf32, #tpu.memory_space<vmem>>) attributes {dimension_semantics = [#tpu.dimension_semantics<parallel>], iteration_bounds = array<i64: 1>, scalar_prefetch = 0 : i64, scratch_operands = 0 : i64, tpu.core_type = #tpu.core_type<tc>, window_params = [{transform_indices = @transform_0, window_bounds = array<i64: 1>}, {transform_indices = @transform_1, window_bounds = array<i64: 8, 768>}, {transform_indices = @transform_2, window_bounds = array<i64: 8, 1>}, {pipeline_mode = #tpu.pipeline_mode<synchronous>, transform_indices = @transform_3, window_bounds = array<i64: 512, 896>}, {transform_indices = @transform_4, window_bounds = array<i64: 8, 384>}]} {
    %c0 = arith.constant 0 : index
    %c0_0 = arith.constant 0 : index
    %0 = vector.load %arg2[%c0, %c0_0] : memref<8x768xf32, #tpu.memory_space<vmem>>, vector<8x768xf32>
    %c0_1 = arith.constant 0 : index
    %c0_2 = arith.constant 0 : index
    %1 = vector.load %arg3[%c0_1, %c0_2] : memref<8x1xi32, #tpu.memory_space<vmem>>, vector<8x1xi32>
    %c0_3 = arith.constant 0 : index
    %2 = memref.load %arg1[%c0_3] : memref<1xf32, #tpu.memory_space<smem>>
    %3 = vector.extract_strided_slice %0 {offsets = [0, 0], sizes = [8, 512], strides = [1, 1]} : vector<8x768xf32> to vector<8x512xf32>
    %4 = vector.extract_strided_slice %0 {offsets = [0, 256], sizes = [8, 128], strides = [1, 1]} : vector<8x768xf32> to vector<8x128xf32>
    %5 = vector.extract_strided_slice %0 {offsets = [0, 384], sizes = [8, 128], strides = [1, 1]} : vector<8x768xf32> to vector<8x128xf32>
    %6 = vector.extract_strided_slice %0 {offsets = [0, 512], sizes = [8, 128], strides = [1, 1]} : vector<8x768xf32> to vector<8x128xf32>
    %7 = vector.extract_strided_slice %0 {offsets = [0, 640], sizes = [8, 4], strides = [1, 1]} : vector<8x768xf32> to vector<8x4xf32>
    %8 = arith.truncf %3 : vector<8x512xf32> to vector<8x512xbf16>
    %c0_4 = arith.constant 0 : index
    %c0_5 = arith.constant 0 : index
    %9 = vector.load %arg4[%c0_4, %c0_5] : memref<512x896xbf16, #tpu.memory_space<vmem>>, vector<512x896xbf16>
    %cst = arith.constant dense<0.000000e+00> : vector<8x896xf32>
    %10 = tpu.matmul %8, %9, %cst {dimension_numbers = #tpu.dot_dimension_numbers<[1], [0], [0], [1], [0, 0, 1, 1], [], []>} : vector<8x512xbf16>, vector<512x896xbf16>, vector<8x896xf32> -> vector<8x896xf32>
    %11 = vector.extract_strided_slice %10 {offsets = [0, 0], sizes = [8, 128], strides = [1, 1]} : vector<8x896xf32> to vector<8x128xf32>
    %12 = vector.extract_strided_slice %10 {offsets = [0, 128], sizes = [8, 128], strides = [1, 1]} : vector<8x896xf32> to vector<8x128xf32>
    %13 = vector.extract_strided_slice %10 {offsets = [0, 256], sizes = [8, 128], strides = [1, 1]} : vector<8x896xf32> to vector<8x128xf32>
    %14 = vector.extract_strided_slice %10 {offsets = [0, 384], sizes = [8, 128], strides = [1, 1]} : vector<8x896xf32> to vector<8x128xf32>
    %15 = vector.extract_strided_slice %10 {offsets = [0, 512], sizes = [8, 128], strides = [1, 1]} : vector<8x896xf32> to vector<8x128xf32>
    %16 = vector.extract_strided_slice %10 {offsets = [0, 640], sizes = [8, 128], strides = [1, 1]} : vector<8x896xf32> to vector<8x128xf32>
    %17 = vector.extract_strided_slice %10 {offsets = [0, 768], sizes = [8, 4], strides = [1, 1]} : vector<8x896xf32> to vector<8x4xf32>
    %18 = vector.extract_strided_slice %10 {offsets = [0, 772], sizes = [8, 4], strides = [1, 1]} : vector<8x896xf32> to vector<8x4xf32>
    %19 = vector.extract_strided_slice %10 {offsets = [0, 776], sizes = [8, 4], strides = [1, 1]} : vector<8x896xf32> to vector<8x4xf32>
    %20 = vector.extract_strided_slice %10 {offsets = [0, 780], sizes = [8, 4], strides = [1, 1]} : vector<8x896xf32> to vector<8x4xf32>
    %c1_i32 = arith.constant 1 : i32
    %21 = vector.broadcast %c1_i32 : i32 to vector<8x1xi32>
    %22 = arith.cmpi eq, %1, %21 : vector<8x1xi32>
    %23 = arith.extui %22 : vector<8x1xi1> to vector<8x1xi32>
    %24 = arith.sitofp %23 : vector<8x1xi32> to vector<8x1xf32>
    %c1_i32_6 = arith.constant 1 : i32
    %25 = vector.broadcast %c1_i32_6 : i32 to vector<8x1xi32>
    %26 = arith.cmpi sgt, %1, %25 : vector<8x1xi32>
    %27 = arith.extui %26 : vector<8x1xi1> to vector<8x1xi32>
    %28 = arith.sitofp %27 : vector<8x1xi32> to vector<8x1xf32>
    %c1_i32_7 = arith.constant 1 : i32
    %29 = vector.broadcast %c1_i32_7 : i32 to vector<8x1xi32>
    %30 = arith.cmpi sge, %1, %29 : vector<8x1xi32>
    %31 = arith.extui %30 : vector<8x1xi1> to vector<8x1xi32>
    %32 = arith.sitofp %31 : vector<8x1xi32> to vector<8x1xf32>
    %c0_i32 = arith.constant 0 : i32
    %33 = vector.broadcast %c0_i32 : i32 to vector<8x1xi32>
    %34 = arith.cmpi eq, %1, %33 : vector<8x1xi32>
    %35 = arith.extui %34 : vector<8x1xi1> to vector<8x1xi32>
    %36 = arith.sitofp %35 : vector<8x1xi32> to vector<8x1xf32>
    %c2_i32 = arith.constant 2 : i32
    %37 = vector.broadcast %c2_i32 : i32 to vector<8x1xi32>
    %38 = arith.cmpi eq, %1, %37 : vector<8x1xi32>
    %39 = arith.extui %38 : vector<8x1xi1> to vector<8x1xi32>
    %40 = arith.sitofp %39 : vector<8x1xi32> to vector<8x1xf32>
    %c2_i32_8 = arith.constant 2 : i32
    %41 = vector.broadcast %c2_i32_8 : i32 to vector<8x1xi32>
    %42 = arith.cmpi sgt, %1, %41 : vector<8x1xi32>
    %43 = arith.extui %42 : vector<8x1xi1> to vector<8x1xi32>
    %44 = arith.sitofp %43 : vector<8x1xi32> to vector<8x1xf32>
    %45 = vector.shape_cast %24 : vector<8x1xf32> to vector<8x1xf32>
    %46 = vector.broadcast %45 : vector<8x1xf32> to vector<8x128xf32>
    %47 = vector.shape_cast %28 : vector<8x1xf32> to vector<8x1xf32>
    %48 = vector.broadcast %47 : vector<8x1xf32> to vector<8x128xf32>
    %49 = vector.shape_cast %32 : vector<8x1xf32> to vector<8x1xf32>
    %50 = vector.broadcast %49 : vector<8x1xf32> to vector<8x128xf32>
    %51 = vector.shape_cast %36 : vector<8x1xf32> to vector<8x1xf32>
    %52 = vector.broadcast %51 : vector<8x1xf32> to vector<8x128xf32>
    %53 = vector.shape_cast %40 : vector<8x1xf32> to vector<8x1xf32>
    %54 = vector.broadcast %53 : vector<8x1xf32> to vector<8x128xf32>
    %55 = vector.shape_cast %44 : vector<8x1xf32> to vector<8x1xf32>
    %56 = vector.broadcast %55 : vector<8x1xf32> to vector<8x128xf32>
    %57 = arith.mulf %46, %11 : vector<8x128xf32>
    %58 = arith.mulf %48, %4 : vector<8x128xf32>
    %59 = arith.addf %57, %58 : vector<8x128xf32>
    %60 = arith.mulf %50, %4 : vector<8x128xf32>
    %61 = arith.mulf %52, %12 : vector<8x128xf32>
    %62 = arith.mulf %50, %4 : vector<8x128xf32>
    %63 = arith.addf %61, %62 : vector<8x128xf32>
    %64 = arith.mulf %54, %6 : vector<8x128xf32>
    %65 = arith.mulf %56, %4 : vector<8x128xf32>
    %66 = arith.addf %64, %65 : vector<8x128xf32>
    %67 = arith.mulf %46, %14 : vector<8x128xf32>
    %68 = arith.mulf %48, %5 : vector<8x128xf32>
    %69 = arith.addf %67, %68 : vector<8x128xf32>
    %70 = arith.mulf %46, %13 : vector<8x128xf32>
    %71 = arith.mulf %48, %5 : vector<8x128xf32>
    %72 = arith.addf %70, %71 : vector<8x128xf32>
    %73 = arith.mulf %52, %15 : vector<8x128xf32>
    %74 = arith.mulf %50, %5 : vector<8x128xf32>
    %75 = arith.addf %73, %74 : vector<8x128xf32>
    %76 = arith.mulf %54, %16 : vector<8x128xf32>
    %77 = arith.mulf %56, %5 : vector<8x128xf32>
    %78 = arith.addf %76, %77 : vector<8x128xf32>
    %79 = vector.broadcast %36 : vector<8x1xf32> to vector<8x4xf32>
    %80 = arith.mulf %79, %17 : vector<8x4xf32>
    %81 = vector.broadcast %32 : vector<8x1xf32> to vector<8x4xf32>
    %82 = arith.mulf %81, %18 : vector<8x4xf32>
    %83 = arith.addf %80, %82 : vector<8x4xf32>
    %84 = vector.broadcast %24 : vector<8x1xf32> to vector<8x4xf32>
    %85 = arith.mulf %84, %19 : vector<8x4xf32>
    %86 = arith.addf %83, %85 : vector<8x4xf32>
    %87 = vector.broadcast %28 : vector<8x1xf32> to vector<8x4xf32>
    %88 = arith.mulf %87, %20 : vector<8x4xf32>
    %89 = arith.addf %86, %88 : vector<8x4xf32>
    %90 = arith.negf %89 : vector<8x4xf32>
    %91 = math.exp %90 : vector<8x4xf32>
    %cst_9 = arith.constant 1.000000e+00 : f32
    %92 = vector.broadcast %cst_9 : f32 to vector<8x4xf32>
    %93 = arith.addf %92, %91 : vector<8x4xf32>
    %94 = arith.divf %92, %93 : vector<8x4xf32>
    %cst_10 = arith.constant dense<0xFF800000> : vector<8xf32>
    %95 = vector.multi_reduction <maximumf>, %94, %cst_10 [1] : vector<8x4xf32> to vector<8xf32>
    %96 = vector.shape_cast %95 : vector<8xf32> to vector<8x1xf32>
    %97 = vector.broadcast %96 : vector<8x1xf32> to vector<8x4xf32>
    %98 = arith.subf %94, %97 : vector<8x4xf32>
    %99 = math.exp %98 : vector<8x4xf32>
    %cst_11 = arith.constant dense<0.000000e+00> : vector<8xf32>
    %100 = vector.multi_reduction <add>, %99, %cst_11 [1] : vector<8x4xf32> to vector<8xf32>
    %101 = vector.shape_cast %100 : vector<8xf32> to vector<8x1xf32>
    %102 = math.log %101 : vector<8x1xf32>
    %103 = arith.addf %96, %102 : vector<8x1xf32>
    %104 = vector.broadcast %103 : vector<8x1xf32> to vector<8x4xf32>
    %105 = arith.subf %94, %104 : vector<8x4xf32>
    %106 = arith.addf %105, %7 : vector<8x4xf32>
    %107 = vector.broadcast %2 : f32 to vector<8x4xf32>
    %108 = arith.mulf %106, %107 : vector<8x4xf32>
    %cst_12 = arith.constant dense<0xFF800000> : vector<8xf32>
    %109 = vector.multi_reduction <maximumf>, %108, %cst_12 [1] : vector<8x4xf32> to vector<8xf32>
    %110 = vector.shape_cast %109 : vector<8xf32> to vector<8x1xf32>
    %111 = vector.broadcast %110 : vector<8x1xf32> to vector<8x4xf32>
    %112 = arith.subf %108, %111 : vector<8x4xf32>
    %113 = math.exp %112 : vector<8x4xf32>
    %cst_13 = arith.constant dense<0.000000e+00> : vector<8xf32>
    %114 = vector.multi_reduction <add>, %113, %cst_13 [1] : vector<8x4xf32> to vector<8xf32>
    %115 = vector.shape_cast %114 : vector<8xf32> to vector<8x1xf32>
    %116 = vector.broadcast %115 : vector<8x1xf32> to vector<8x4xf32>
    %117 = arith.divf %113, %116 : vector<8x4xf32>
    %c0_i32_14 = arith.constant 0 : i32
    %118 = vector.broadcast %c0_i32_14 : i32 to vector<8x1xi32>
    %119 = arith.cmpi ne, %1, %118 : vector<8x1xi32>
    %120 = arith.extui %119 : vector<8x1xi1> to vector<8x1xi32>
    %121 = arith.sitofp %120 : vector<8x1xi32> to vector<8x1xf32>
    %c1_i32_15 = arith.constant 1 : i32
    %122 = vector.broadcast %c1_i32_15 : i32 to vector<8x1xi32>
    %123 = arith.cmpi ne, %1, %122 : vector<8x1xi32>
    %124 = arith.extui %123 : vector<8x1xi1> to vector<8x1xi32>
    %125 = arith.sitofp %124 : vector<8x1xi32> to vector<8x1xf32>
    %126 = vector.extract_strided_slice %117 {offsets = [0, 0], sizes = [8, 1], strides = [1, 1]} : vector<8x4xf32> to vector<8x1xf32>
    %127 = arith.mulf %121, %126 : vector<8x1xf32>
    %128 = arith.mulf %121, %125 : vector<8x1xf32>
    %129 = vector.extract_strided_slice %117 {offsets = [0, 1], sizes = [8, 1], strides = [1, 1]} : vector<8x4xf32> to vector<8x1xf32>
    %130 = arith.mulf %128, %129 : vector<8x1xf32>
    %131 = vector.extract_strided_slice %117 {offsets = [0, 2], sizes = [8, 1], strides = [1, 1]} : vector<8x4xf32> to vector<8x1xf32>
    %132 = arith.mulf %125, %131 : vector<8x1xf32>
    %133 = vector.extract_strided_slice %117 {offsets = [0, 3], sizes = [8, 1], strides = [1, 1]} : vector<8x4xf32> to vector<8x1xf32>
    %134 = arith.mulf %121, %133 : vector<8x1xf32>
    %135 = arith.mulf %127, %127 : vector<8x1xf32>
    %136 = arith.mulf %130, %130 : vector<8x1xf32>
    %137 = arith.addf %135, %136 : vector<8x1xf32>
    %138 = arith.mulf %132, %132 : vector<8x1xf32>
    %139 = arith.addf %137, %138 : vector<8x1xf32>
    %140 = arith.mulf %134, %134 : vector<8x1xf32>
    %141 = arith.addf %139, %140 : vector<8x1xf32>
    %cst_16 = arith.constant 1.000000e-24 : f32
    %142 = vector.broadcast %cst_16 : f32 to vector<8x1xf32>
    %143 = arith.maximumf %141, %142 : vector<8x1xf32>
    %144 = math.rsqrt %143 : vector<8x1xf32>
    %145 = arith.mulf %127, %144 : vector<8x1xf32>
    %146 = arith.mulf %130, %144 : vector<8x1xf32>
    %147 = arith.mulf %132, %144 : vector<8x1xf32>
    %148 = arith.mulf %134, %144 : vector<8x1xf32>
    %149 = vector.shape_cast %145 : vector<8x1xf32> to vector<8x1xf32>
    %150 = vector.broadcast %149 : vector<8x1xf32> to vector<8x128xf32>
    %151 = vector.shape_cast %146 : vector<8x1xf32> to vector<8x1xf32>
    %152 = vector.broadcast %151 : vector<8x1xf32> to vector<8x128xf32>
    %153 = vector.shape_cast %147 : vector<8x1xf32> to vector<8x1xf32>
    %154 = vector.broadcast %153 : vector<8x1xf32> to vector<8x128xf32>
    %155 = vector.shape_cast %148 : vector<8x1xf32> to vector<8x1xf32>
    %156 = vector.broadcast %155 : vector<8x1xf32> to vector<8x128xf32>
    %157 = arith.mulf %150, %59 : vector<8x128xf32>
    %158 = arith.mulf %152, %66 : vector<8x128xf32>
    %159 = arith.addf %157, %158 : vector<8x128xf32>
    %160 = arith.mulf %154, %63 : vector<8x128xf32>
    %161 = arith.addf %159, %160 : vector<8x128xf32>
    %162 = arith.mulf %156, %60 : vector<8x128xf32>
    %163 = arith.addf %161, %162 : vector<8x128xf32>
    %164 = arith.mulf %150, %69 : vector<8x128xf32>
    %165 = arith.mulf %152, %78 : vector<8x128xf32>
    %166 = arith.addf %164, %165 : vector<8x128xf32>
    %167 = arith.mulf %154, %75 : vector<8x128xf32>
    %168 = arith.addf %166, %167 : vector<8x128xf32>
    %169 = arith.mulf %156, %72 : vector<8x128xf32>
    %170 = arith.addf %168, %169 : vector<8x128xf32>
    %171 = arith.sitofp %1 : vector<8x1xi32> to vector<8x1xf32>
    %172 = math.floor %145 : vector<8x1xf32>
    %173 = arith.mulf %172, %171 : vector<8x1xf32>
    %174 = math.floor %146 : vector<8x1xf32>
    %cst_17 = arith.constant 1.000000e+00 : f32
    %175 = vector.broadcast %cst_17 : f32 to vector<8x1xf32>
    %176 = arith.subf %171, %175 : vector<8x1xf32>
    %177 = arith.mulf %174, %176 : vector<8x1xf32>
    %178 = arith.addf %173, %177 : vector<8x1xf32>
    %179 = math.floor %147 : vector<8x1xf32>
    %cst_18 = arith.constant 1.000000e+00 : f32
    %180 = vector.broadcast %cst_18 : f32 to vector<8x1xf32>
    %181 = arith.addf %171, %180 : vector<8x1xf32>
    %182 = arith.mulf %179, %181 : vector<8x1xf32>
    %183 = arith.addf %178, %182 : vector<8x1xf32>
    %184 = math.floor %148 : vector<8x1xf32>
    %185 = arith.mulf %184, %171 : vector<8x1xf32>
    %186 = arith.addf %183, %185 : vector<8x1xf32>
    %187 = arith.addf %147, %148 : vector<8x1xf32>
    %188 = arith.addf %146, %148 : vector<8x1xf32>
    %cst_19 = arith.constant 0.000000e+00 : f32
    %189 = vector.broadcast %cst_19 : f32 to vector<8x125xf32>
    %190 = tpu.concatenate %186, %187, %188, %189 in 1 : vector<8x1xf32>, vector<8x1xf32>, vector<8x1xf32>, vector<8x125xf32> -> vector<8x128xf32>
    %191 = tpu.concatenate %163, %170, %190 in 1 : vector<8x128xf32>, vector<8x128xf32>, vector<8x128xf32> -> vector<8x384xf32>
    %c0_20 = arith.constant 0 : index
    %c0_21 = arith.constant 0 : index
    %192 = vector.load %arg5[%c0_20, %c0_21] : memref<8x384xf32, #tpu.memory_space<vmem>>, vector<8x384xf32>
    tpu.vector_store %arg5[%c0_20, %c0_21], %191 {strides = array<i32>} : memref<8x384xf32, #tpu.memory_space<vmem>>, vector<8x384xf32>,
    return
  }
  func.func @transform_0(%arg0: i32) -> i32 {
    %c0_i32 = arith.constant 0 : i32
    %c0_i32_0 = arith.constant 0 : i32
    return %c0_i32 : i32
  }
  func.func @transform_1(%arg0: i32) -> (i32, i32) {
    %c0_i32 = arith.constant 0 : i32
    %c0_i32_0 = arith.constant 0 : i32
    return %arg0, %c0_i32 : i32, i32
  }
  func.func @transform_2(%arg0: i32) -> (i32, i32) {
    %c0_i32 = arith.constant 0 : i32
    %c0_i32_0 = arith.constant 0 : i32
    return %arg0, %c0_i32 : i32, i32
  }
  func.func @transform_3(%arg0: i32) -> (i32, i32) {
    %c0_i32 = arith.constant 0 : i32
    %c0_i32_0 = arith.constant 0 : i32
    %c0_i32_1 = arith.constant 0 : i32
    return %c0_i32, %c0_i32_0 : i32, i32
  }
  func.func @transform_4(%arg0: i32) -> (i32, i32) {
    %c0_i32 = arith.constant 0 : i32
    %c0_i32_0 = arith.constant 0 : i32
    return %arg0, %c0_i32 : i32, i32
  }
}

</mosaic_0001>

<bundles_post_ra>
// kernel: tpu_custom_call.1
= control target key start
LH: loop header
LB: loop body
LE: loop exit
PB: predicated region body
PF: predicated region fallthrough
CT: control target
= control target key end

     0   :  { %10 = vsyncpa [#allocation4], 0  ;;  %s2874_s0 = inlined_call_operand.<no memory space> [shape: f32[1], index: 0, kind: input, shape index: {}]   ;;  %s2875_s1 = inlined_call_operand.hbm [shape: f32[8,768], index: 1, kind: input, shape index: {}]   ;;  %s2876_s2 = inlined_call_operand.vmem [shape: s32[8,1], index: 2, kind: input, shape index: {}]   ;;  %s2877_s3 = inlined_call_operand.hbm [shape: bf16[512,896], index: 3, kind: input, shape index: {}]   ;;  %s2878_s4 = inlined_call_operand.hbm [shape: f32[8,384], index: 4, kind: output, shape index: {}]  }
   0x1   :  { %11 = vsyncpa [#allocation7], 0 }
   0x2   :  { %12 = vsyncpa [#allocation5], 0  ;;  %s2733_s15 = smov [#allocation3]   ;;  %s2734_s17 = smov [#allocation6]  }
   0x3   :  { %s21_s16 = sshll.u32 %s2733_s15, 4  ;;  %s32_s18 = sshll.u32 %s2734_s17, 4  ;;  %s22_s16 = int_to_ptr.vmem [resolvable:$true] %s21_s16  ;;  %s33_s18 = int_to_ptr.vmem [resolvable:$true] %s32_s18 }
   0x4   :  { %s2675_s19 = scalar_lea.vmem %s22_s16, 768  ;;  %p2680_p1 = scmp.lt.s32.totalorder %s22_s16, %s22_s16 }
   0x5   :  { %p2676_p0 = scmp.ne.s32.totalorder %s22_s16, %s2675_s19  ;;  %p2681_p2 = scmp.lt.s32.totalorder %s2675_s19, %s2675_s19 }
   0x7   :  { %p2682_p3 = por %p2681_p2, %p2680_p1 }
   0x9   :  { %p2683_p4 = pnand %p2682_p3, %p2676_p0 }
   0xb   :  { %2686 = shalt.err (!%p2683_p4)
}
   0xc   :  { %24 = dma.hbm_to_vmem [thread:$0]  %s2875_s1, 768, %s22_s16, [#allocation4]  }
   0xd   :  { %s2695_s22 = scalar_lea.vmem %s33_s18, 28672  ;;  %p2700_p6 = scmp.lt.s32.totalorder %s33_s18, %s33_s18 }
   0xe   :  { %p2696_p5 = scmp.ne.s32.totalorder %s33_s18, %s2695_s22  ;;  %p2701_p7 = scmp.lt.s32.totalorder %s2695_s22, %s2695_s22 }
  0x10   :  { %p2702_p8 = por %p2701_p7, %p2700_p6 }
  0x12   :  { %p2703_p9 = pnand %p2702_p8, %p2696_p5 }
  0x14   :  { %2706 = shalt.err (!%p2703_p9)
}
  0x15   :  { %s2735_s23 = smov 448   ;;  %s2736_s24 = smov 28  }
  0x16   :  { %38 = dma.hbm_to_vmem [thread:$0]  %s2877_s3, 28672, %s33_s18, [#allocation7], %s2735_s23, %s2735_s23, %s2736_s24  }
  0x17   :  { %2727 = dma.done.wait [#allocation4], 768  }
  0x18   :  { %2728 = vsyncadd [#allocation4], 4294966528 }
  0x19   :  { %2729 = dma.done.wait [#allocation7], 28672  }
  0x1a   :  { %2730 = vsyncadd [#allocation7], 4294938624  ;;  %v2330_v0 = vld [vmem:[#allocation6 + $0x18c] ss:$28 sps:$4 sm:$0xff]   ;;  %v2336_v4 = vld [vmem:[#allocation6 + $0x154] ss:$28 sps:$4 sm:$0xff]  }
  0x1b   :  { %v2332_v1 = vld [vmem:[#allocation6 + $0x50c] ss:$28 sps:$4 sm:$0xff]   ;;  %1466 = vmatprep.subr.bf16.mxu0 %v2330_v0  ;;  %v2338_v5 = vld [vmem:[#allocation6 + $0x4d4] ss:$28 sps:$4 sm:$0xff]   ;;  %v2737_v8 = vmov 0   ;;  %v47_v47 = vld [vmem:[#allocation3 + $0x8] sm:$0xff] }
  0x1c   :  { %v2334_v2 = vld [vmem:[#allocation6 + $0x188] ss:$28 sps:$4 sm:$0xff]   ;;  %1507 = vmatprep.subr.bf16.mxu1 %v2332_v1  ;;  %v2340_v6 = vld [vmem:[#allocation6 + $0x150] ss:$28 sps:$4 sm:$0xff]   ;;  %2323 = vset.pattern.permute.xlu0 %v2737_v8  ;;  %v2342_v9 = vld [vmem:[#allocation6 + $0x11c] ss:$28 sps:$4 sm:$0xff]   ;;  %v2779_v50 = vpack.c.bf16 %v47_v47, %v47_v47 }
  0x1d   :  { %v2335_v3 = vld [vmem:[#allocation6 + $0x508] ss:$28 sps:$4 sm:$0xff]   ;;  %1467 = vmatpush1.bf16.msra.mxu0 %v2334_v2  ;;  %v2341_v7 = vld [vmem:[#allocation6 + $0x4d0] ss:$28 sps:$4 sm:$0xff]   ;;  %2324 = vset.pattern.permute.xlu1 %v2737_v8  ;;  %v2344_v10 = vld [vmem:[#allocation6 + $0x49c] ss:$28 sps:$4 sm:$0xff]  }
  0x1e   :  { %1508 = vmatpush1.bf16.msra.mxu1 %v2335_v3  ;;  %1468 = vmatprep.subr.bf16.mxu0 %v2336_v4  ;;  %v2346_v11 = vld [vmem:[#allocation6 + $0x118] ss:$28 sps:$4 sm:$0xff]   ;;  %v2348_v13 = vld [vmem:[#allocation6 + $0xe4] ss:$28 sps:$4 sm:$0xff]   ;;  %v2354_v17 = vld [vmem:[#allocation6 + $0xac] ss:$28 sps:$4 sm:$0xff]  }
  0x1f   :  { %1509 = vmatprep.subr.bf16.mxu1 %v2338_v5  ;;  %v2347_v12 = vld [vmem:[#allocation6 + $0x498] ss:$28 sps:$4 sm:$0xff]   ;;  %v2350_v14 = vld [vmem:[#allocation6 + $0x464] ss:$28 sps:$4 sm:$0xff]   ;;  %v2356_v18 = vld [vmem:[#allocation6 + $0x42c] ss:$28 sps:$4 sm:$0xff]   ;;  %1498 = vmatprep.mubr.bf16.mxu0 %v2779_v50 }
  0x20   :  { %v2352_v15 = vld [vmem:[#allocation6 + $0xe0] ss:$28 sps:$4 sm:$0xff]   ;;  %v2358_v19 = vld [vmem:[#allocation6 + $0xa8] ss:$28 sps:$4 sm:$0xff]   ;;  %v2360_v21 = vld [vmem:[#allocation6 + $0x74] ss:$28 sps:$4 sm:$0xff]  }
  0x21   :  { %1469 = vmatpush1.bf16.msra.mxu0 %v2340_v6  ;;  %v2353_v16 = vld [vmem:[#allocation6 + $0x460] ss:$28 sps:$4 sm:$0xff]   ;;  %v2359_v20 = vld [vmem:[#allocation6 + $0x428] ss:$28 sps:$4 sm:$0xff]   ;;  %v2362_v22 = vld [vmem:[#allocation6 + $0x3f4] ss:$28 sps:$4 sm:$0xff]  }
  0x22   :  { %1510 = vmatpush1.bf16.msra.mxu1 %v2341_v7  ;;  %1470 = vmatprep.subr.bf16.mxu0 %v2342_v9  ;;  %v2364_v23 = vld [vmem:[#allocation6 + $0x70] ss:$28 sps:$4 sm:$0xff]   ;;  %v2366_v25 = vld [vmem:[#allocation6 + $0x3c] ss:$28 sps:$4 sm:$0xff]   ;;  %v2372_v29 = vld [vmem:[#allocation6 + $0x4] ss:$28 sps:$4 sm:$0xff]  }
  0x23   :  { %1511 = vmatprep.subr.bf16.mxu1 %v2344_v10  ;;  %v2365_v24 = vld [vmem:[#allocation6 + $0x3f0] ss:$28 sps:$4 sm:$0xff]   ;;  %v2368_v26 = vld [vmem:[#allocation6 + $0x3bc] ss:$28 sps:$4 sm:$0xff]   ;;  %v2374_v30 = vld [vmem:[#allocation6 + $0x384] ss:$28 sps:$4 sm:$0xff]  }
  0x24   :  { %v2370_v27 = vld [vmem:[#allocation6 + $0x38] ss:$28 sps:$4 sm:$0xff]   ;;  %v2376_v31 = vld [vmem:[#allocation6] ss:$28 sps:$4 sm:$0xff]   ;;  %v2378_v33 = vld [vmem:[#allocation6 + $0x34c] ss:$28 sps:$4 sm:$0xff]  }
  0x25   :  { %1471 = vmatpush1.bf16.msra.mxu0 %v2346_v11  ;;  %v2371_v28 = vld [vmem:[#allocation6 + $0x3b8] ss:$28 sps:$4 sm:$0xff]   ;;  %v2377_v32 = vld [vmem:[#allocation6 + $0x380] ss:$28 sps:$4 sm:$0xff]   ;;  %v2380_v34 = vld [vmem:[#allocation6 + $0x6cc] ss:$28 sps:$4 sm:$0xff]  }
  0x26   :  { %1512 = vmatpush1.bf16.msra.mxu1 %v2347_v12  ;;  %1472 = vmatprep.subr.bf16.mxu0 %v2348_v13  ;;  %v2382_v35 = vld [vmem:[#allocation6 + $0x348] ss:$28 sps:$4 sm:$0xff]   ;;  %v2384_v37 = vld [vmem:[#allocation6 + $0x314] ss:$28 sps:$4 sm:$0xff]   ;;  %v2390_v41 = vld [vmem:[#allocation6 + $0x2dc] ss:$28 sps:$4 sm:$0xff]  }
  0x27   :  { %1513 = vmatprep.subr.bf16.mxu1 %v2350_v14  ;;  %v2383_v36 = vld [vmem:[#allocation6 + $0x6c8] ss:$28 sps:$4 sm:$0xff]   ;;  %v2386_v38 = vld [vmem:[#allocation6 + $0x694] ss:$28 sps:$4 sm:$0xff]   ;;  %v2392_v42 = vld [vmem:[#allocation6 + $0x65c] ss:$28 sps:$4 sm:$0xff]  }
  0x28   :  { %v2388_v39 = vld [vmem:[#allocation6 + $0x310] ss:$28 sps:$4 sm:$0xff]   ;;  %v2394_v43 = vld [vmem:[#allocation6 + $0x2d8] ss:$28 sps:$4 sm:$0xff]   ;;  %v2396_v45 = vld [vmem:[#allocation6 + $0x2a4] ss:$28 sps:$4 sm:$0xff]  }
  0x29   :  { %1473 = vmatpush1.bf16.msra.mxu0 %v2352_v15  ;;  %v2389_v40 = vld [vmem:[#allocation6 + $0x690] ss:$28 sps:$4 sm:$0xff]   ;;  %v2395_v44 = vld [vmem:[#allocation6 + $0x658] ss:$28 sps:$4 sm:$0xff]   ;;  %v2398_v46 = vld [vmem:[#allocation6 + $0x624] ss:$28 sps:$4 sm:$0xff]  }
  0x2a   :  { %1514 = vmatpush1.bf16.msra.mxu1 %v2353_v16  ;;  %1474 = vmatprep.subr.bf16.mxu0 %v2354_v17  ;;  %v2400_v48 = vld [vmem:[#allocation6 + $0x2a0] ss:$28 sps:$4 sm:$0xff]   ;;  %v49_v51 = vld [vmem:[#allocation3 + $0x18] sm:$0xff]  ;;  %v2408_v57 = vld [vmem:[#allocation6 + $0x234] ss:$28 sps:$4 sm:$0xff]   ;;  %s2739_s27 = smov 120  }
  0x2b   :  { %1515 = vmatprep.subr.bf16.mxu1 %v2356_v18  ;;  %v2401_v49 = vld [vmem:[#allocation6 + $0x620] ss:$28 sps:$4 sm:$0xff]   ;;  %v2402_v52 = vld [vmem:[#allocation6 + $0x26c] ss:$28 sps:$4 sm:$0xff]   ;;  %v2781_v53 = vpack.c.bf16 %v49_v51, %v49_v51  ;;  %v2410_v58 = vld [vmem:[#allocation6 + $0x5b4] ss:$28 sps:$4 sm:$0xff]  }
  0x2c   :  { %v2404_v54 = vld [vmem:[#allocation6 + $0x5ec] ss:$28 sps:$4 sm:$0xff]   ;;  %v2414_v61 = vld [vmem:[#allocation6 + $0x1fc] ss:$28 sps:$4 sm:$0xff]   ;;  %v2420_v1 = vld [vmem:[#allocation6 + $0x1c4] ss:$28 sps:$4 sm:$0xff]  }
  0x2d   :  { %1475 = vmatpush1.bf16.msra.mxu0 %v2358_v19  ;;  %1539 = vmatprep.mubr.bf16.mxu1 %v2781_v53  ;;  %v2406_v55 = vld [vmem:[#allocation6 + $0x268] ss:$28 sps:$4 sm:$0xff]   ;;  %v2412_v59 = vld [vmem:[#allocation6 + $0x230] ss:$28 sps:$4 sm:$0xff]   ;;  %v2416_v62 = vld [vmem:[#allocation6 + $0x57c] ss:$28 sps:$4 sm:$0xff]  }
  0x2e   :  { %1516 = vmatpush1.bf16.msra.mxu1 %v2359_v20  ;;  %1476 = vmatprep.subr.bf16.mxu0 %v2360_v21  ;;  %v2407_v56 = vld [vmem:[#allocation6 + $0x5e8] ss:$28 sps:$4 sm:$0xff]   ;;  %v2413_v60 = vld [vmem:[#allocation6 + $0x5b0] ss:$28 sps:$4 sm:$0xff]   ;;  %v2418_v63 = vld [vmem:[#allocation6 + $0x1f8] ss:$28 sps:$4 sm:$0xff]  }
  0x2f   :  { %1517 = vmatprep.subr.bf16.mxu1 %v2362_v22  ;;  %v2419_v0 = vld [vmem:[#allocation6 + $0x578] ss:$28 sps:$4 sm:$0xff]   ;;  %v2422_v2 = vld [vmem:[#allocation6 + $0x544] ss:$28 sps:$4 sm:$0xff]   ;;  %v2426_v11 = vld [vmem:[#allocation6 + $0x190] ss:$28 sps:$4 sm:$0xff]  }
  0x30   :  { %v2424_v3 = vld [vmem:[#allocation6 + $0x1c0] ss:$28 sps:$4 sm:$0xff]   ;;  %v46_v5 = vld [vmem:[#allocation3] sm:$0xff]  ;;  %v2446_v21 = vld [vmem:[#allocation6 + $0xec] ss:$28 sps:$4 sm:$0xff]   ;;  %s2740_s28 = smov 124  }
  0x31   :  { %1477 = vmatpush1.bf16.msra.mxu0 %v2364_v23  ;;  %v2425_v4 = vld [vmem:[#allocation6 + $0x540] ss:$28 sps:$4 sm:$0xff]   ;;  %v2428_v7 = vld [vmem:[#allocation6 + $0x194] ss:$28 sps:$4 sm:$0xff]   ;;  %v2785_v9 = vpack.c.bf16 %v46_v5, %v46_v5  ;;  %v2449_v22 = vld [vmem:[#allocation6 + $0x46c] ss:$28 sps:$4 sm:$0xff]  }
  0x32   :  { %1518 = vmatpush1.bf16.msra.mxu1 %v2365_v24  ;;  %1478 = vmatprep.subr.bf16.mxu0 %v2366_v25  ;;  %v48_v6 = vld [vmem:[#allocation3 + $0x10] sm:$0xff]  ;;  %v2431_v8 = vld [vmem:[#allocation6 + $0x514] ss:$28 sps:$4 sm:$0xff]   ;;  %v2434_v13 = vld [vmem:[#allocation6 + $0x15c] ss:$28 sps:$4 sm:$0xff]   ;;  %s2741_s29 = smov 116  }
  0x33   :  { %1519 = vmatprep.subr.bf16.mxu1 %v2368_v26  ;;  %v2787_v10 = vpack.c.bf16 %v48_v6, %v48_v6  ;;  %v2429_v12 = vld [vmem:[#allocation6 + $0x510] ss:$28 sps:$4 sm:$0xff]   ;;  %v2437_v14 = vld [vmem:[#allocation6 + $0x4dc] ss:$28 sps:$4 sm:$0xff]   ;;  %v2440_v17 = vld [vmem:[#allocation6 + $0x124] ss:$28 sps:$4 sm:$0xff]  }
  0x34   :  { %v2432_v15 = vld [vmem:[#allocation6 + $0x158] ss:$28 sps:$4 sm:$0xff]   ;;  %v2443_v18 = vld [vmem:[#allocation6 + $0x4a4] ss:$28 sps:$4 sm:$0xff]   ;;  %v2474_v47 = vld [vmem:[#allocation6 + $0x350] ss:$28 sps:$4 sm:$0xff]  }
  0x35   :  { %1479 = vmatpush1.bf16.msra.mxu0 %v2370_v27  ;;  %v2435_v16 = vld [vmem:[#allocation6 + $0x4d8] ss:$28 sps:$4 sm:$0xff]   ;;  %v2438_v19 = vld [vmem:[#allocation6 + $0x120] ss:$28 sps:$4 sm:$0xff]   ;;  %v2444_v23 = vld [vmem:[#allocation6 + $0xe8] ss:$28 sps:$4 sm:$0xff]  }
  0x36   :  { %1520 = vmatpush1.bf16.msra.mxu1 %v2371_v28  ;;  %1480 = vmatprep.subr.bf16.mxu0 %v2372_v29  ;;  %v2441_v20 = vld [vmem:[#allocation6 + $0x4a0] ss:$28 sps:$4 sm:$0xff]   ;;  %v2447_v24 = vld [vmem:[#allocation6 + $0x468] ss:$28 sps:$4 sm:$0xff]   ;;  %v2452_v25 = vld [vmem:[#allocation6 + $0xb4] ss:$28 sps:$4 sm:$0xff]  }
  0x37   :  { %1521 = vmatprep.subr.bf16.mxu1 %v2374_v30  ;;  %v2455_v26 = vld [vmem:[#allocation6 + $0x434] ss:$28 sps:$4 sm:$0xff]   ;;  %v2458_v29 = vld [vmem:[#allocation6 + $0x7c] ss:$28 sps:$4 sm:$0xff]   ;;  %vm1885_vm4 = vcmask 31744   ;;  %s2743_s6 = smov 127  }
  0x38   :  { %v2450_v27 = vld [vmem:[#allocation6 + $0xb0] ss:$28 sps:$4 sm:$0xff]   ;;  %v2461_v30 = vld [vmem:[#allocation6 + $0x3fc] ss:$28 sps:$4 sm:$0xff]   ;;  %s2744_s7 = smov 125   ;;  %s2746_s10 = smov 1  }
  0x39   :  { %1481 = vmatpush1.bf16.msra.mxu0 %v2376_v31  ;;  %v2453_v28 = vld [vmem:[#allocation6 + $0x430] ss:$28 sps:$4 sm:$0xff]   ;;  %v2456_v31 = vld [vmem:[#allocation6 + $0x78] ss:$28 sps:$4 sm:$0xff]   ;;  %vm2005_vm9 = vcmask 7168   ;;  %vm2007_vm10 = vcmask 15360  }
  0x3a   :  { %1522 = vmatpush1.bf16.msra.mxu1 %v2377_v32  ;;  %1482 = vmatprep.subr.bf16.mxu0 %v2378_v33  ;;  %v2459_v32 = vld [vmem:[#allocation6 + $0x3f8] ss:$28 sps:$4 sm:$0xff]   ;;  %v2464_v33 = vld [vmem:[#allocation6 + $0x44] ss:$28 sps:$4 sm:$0xff]   ;;  %v2477_v51 = vld [vmem:[#allocation6 + $0x6d0] ss:$28 sps:$4 sm:$0xff]  }
  0x3b   :  { %1523 = vmatprep.subr.bf16.mxu1 %v2380_v34  ;;  %v2467_v34 = vld [vmem:[#allocation6 + $0x3c4] ss:$28 sps:$4 sm:$0xff]   ;;  %v2506_v5 = vld [vmem:[#allocation6 + $0x23c] ss:$28 sps:$4 sm:$0xff]   ;;  %s2747_s11 = smov [#allocation8]   ;;  %vm2009_vm11 = vcmask 23552  }
  0x3c   :  { %v2509_v6 = vld [vmem:[#allocation6 + $0x5bc] ss:$28 sps:$4 sm:$0xff]   ;;  %s2020_s12 = sshll.u32 %s2747_s11, 4  ;;  %s2021_s12 = int_to_ptr.vmem [resolvable:$true] %s2020_s12 }
  0x3d   :  { %1483 = vmatpush2.bf16.msra.mxu0 %v2382_v35  ;;  %v2462_v35 = vld [vmem:[#allocation6 + $0x40] ss:$28 sps:$4 sm:$0xff]   ;;  %s2707_s13 = scalar_lea.vmem %s2021_s12, 384  ;;  %p2712_p11 = scmp.lt.s32.totalorder %s2021_s12, %s2021_s12 }
  0x3e   :  { %1524 = vmatpush2.bf16.msra.mxu1 %v2383_v36  ;;  %1484 = vmatprep.subr.bf16.mxu0 %v2384_v37  ;;  %v2465_v36 = vld [vmem:[#allocation6 + $0x3c0] ss:$28 sps:$4 sm:$0xff]   ;;  %v2470_v37 = vld [vmem:[#allocation6 + $0xc] ss:$28 sps:$4 sm:$0xff]   ;;  %p2708_p10 = scmp.ne.s32.totalorder %s2021_s12, %s2707_s13  ;;  %p2713_p12 = scmp.lt.s32.totalorder %s2707_s13, %s2707_s13 }
  0x3f   :  { %1525 = vmatprep.subr.bf16.mxu1 %v2386_v38  ;;  %v2473_v38 = vld [vmem:[#allocation6 + $0x38c] ss:$28 sps:$4 sm:$0xff]  }
  0x40   :  { %p2714_p13 = por %p2713_p12, %p2712_p11 }
  0x41   :  { %1485 = vmatpush2.bf16.msra.mxu0 %v2388_v39  ;;  %v2796_v39 = vld [vmem:[%s2876_s2] sm:$0xff] }
  0x42   :  { %1526 = vmatpush2.bf16.msra.mxu1 %v2389_v40  ;;  %1486 = vmatprep.subr.bf16.mxu0 %v2390_v41  ;;  %vm1798_vm0 = vcmp.ge.s32.totalorder %v2796_v39, 1  ;;  %v2468_v40 = vld [vmem:[#allocation6 + $0x8] ss:$28 sps:$4 sm:$0xff]   ;;  %v2738_v41 = vmov 0.0   ;;  %vm1795_vm1 = vcmp.gt.s32.totalorder %v2796_v39, 1  ;;  %vm1792_vm2 = vcmp.eq.s32.totalorder %v2796_v39, 1  ;;  %p2715_p0 = pnand %p2714_p13, %p2708_p10 }
  0x43   :  { %1527 = vmatprep.subr.bf16.mxu1 %v2392_v42  ;;  %v2256_v42 = vsel %vm1798_vm0, 1.0, %v2738_v41  ;;  %vm1801_vm3 = vcmp.eq.s32.totalorder %v2796_v39, 0  ;;  %vm1804_vm5 = vcmp.eq.s32.totalorder %v2796_v39, 2  ;;  %vm1807_vm6 = vcmp.gt.s32.totalorder %v2796_v39, 2 }
  0x44   :  { %1822 = vperm.xlu0 %2323, %v2256_v42   ;;  %v2557_v42 = vld [vmem:[#allocation6 + $0x404] ss:$28 sps:$4 sm:$0xff]  }
  0x45   :  { %1487 = vmatpush2.bf16.msra.mxu0 %v2394_v43  ;;  %v2471_v43 = vld [vmem:[#allocation6 + $0x388] ss:$28 sps:$4 sm:$0xff]  }
  0x46   :  { %1528 = vmatpush2.bf16.msra.mxu1 %v2395_v44  ;;  %1488 = vmatprep.subr.bf16.mxu0 %v2396_v45  ;;  %v2255_v44 = vsel %vm1795_vm1, 1.0, %v2738_v41  ;;  %v2476_v45 = vld [vmem:[#allocation6 + $0x354] ss:$28 sps:$4 sm:$0xff]  }
  0x47   :  { %1529 = vmatprep.subr.bf16.mxu1 %v2398_v46  ;;  %v2479_v46 = vld [vmem:[#allocation6 + $0x6d4] ss:$28 sps:$4 sm:$0xff]   ;;  %1817 = vperm.xlu1 %2324, %v2255_v44   ;;  %v2555_v44 = vld [vmem:[#allocation6 + $0x400] ss:$28 sps:$4 sm:$0xff]  }
  0x49   :  { %1489 = vmatpush2.bf16.msra.mxu0 %v2400_v48  ;;  %v2254_v48 = vsel %vm1792_vm2, 1.0, %v2738_v41 }
  0x4a   :  { %1530 = vmatpush2.bf16.msra.mxu1 %v2401_v49  ;;  %1490 = vmatprep.subr.bf16.mxu0 %v2402_v52  ;;  %v2257_v49 = vsel %vm1801_vm3, 1.0, %v2738_v41  ;;  %v2482_v52 = vld [vmem:[#allocation6 + $0x31c] ss:$28 sps:$4 sm:$0xff]  }
  0x4b   :  { %1531 = vmatprep.subr.bf16.mxu1 %v2404_v54  ;;  %v2485_v54 = vld [vmem:[#allocation6 + $0x69c] ss:$28 sps:$4 sm:$0xff]   ;;  %1812 = vperm.xlu0 %2323, %v2254_v48   ;;  %v2561_v48 = vld [vmem:[#allocation6 + $0x3c8] ss:$28 sps:$4 sm:$0xff]  }
  0x4c   :  { %1827 = vperm.xlu1 %2324, %v2257_v49   ;;  %v2566_v49 = vld [vmem:[#allocation6 + $0x14] ss:$28 sps:$4 sm:$0xff]  }
  0x4d   :  { %1491 = vmatpush2.bf16.msra.mxu0 %v2406_v55  ;;  %v2480_v55 = vld [vmem:[#allocation6 + $0x318] ss:$28 sps:$4 sm:$0xff]  }
  0x4e   :  { %1532 = vmatpush2.bf16.msra.mxu1 %v2407_v56  ;;  %1492 = vmatprep.subr.bf16.mxu0 %v2408_v57  ;;  %v2483_v56 = vld [vmem:[#allocation6 + $0x698] ss:$28 sps:$4 sm:$0xff]   ;;  %v2488_v57 = vld [vmem:[#allocation6 + $0x2e4] ss:$28 sps:$4 sm:$0xff]  }
  0x4f   :  { %1533 = vmatprep.subr.bf16.mxu1 %v2410_v58  ;;  %v2491_v58 = vld [vmem:[#allocation6 + $0x664] ss:$28 sps:$4 sm:$0xff]  }
  0x51   :  { %1493 = vmatpush2.bf16.msra.mxu0 %v2412_v59  ;;  %v2486_v59 = vld [vmem:[#allocation6 + $0x2e0] ss:$28 sps:$4 sm:$0xff]  }
  0x52   :  { %1534 = vmatpush2.bf16.msra.mxu1 %v2413_v60  ;;  %1494 = vmatprep.subr.bf16.mxu0 %v2414_v61  ;;  %v2489_v60 = vld [vmem:[#allocation6 + $0x660] ss:$28 sps:$4 sm:$0xff]   ;;  %v2494_v61 = vld [vmem:[#allocation6 + $0x2ac] ss:$28 sps:$4 sm:$0xff]  }
  0x53   :  { %1535 = vmatprep.subr.bf16.mxu1 %v2416_v62  ;;  %v2497_v62 = vld [vmem:[#allocation6 + $0x62c] ss:$28 sps:$4 sm:$0xff]  }
  0x55   :  { %1495 = vmatpush2.bf16.msra.mxu0 %v2418_v63  ;;  %v2492_v63 = vld [vmem:[#allocation6 + $0x2a8] ss:$28 sps:$4 sm:$0xff]  }
  0x56   :  { %1536 = vmatpush2.bf16.msra.mxu1 %v2419_v0  ;;  %1496 = vmatprep.subr.bf16.mxu0 %v2420_v1  ;;  %v2495_v0 = vld [vmem:[#allocation6 + $0x628] ss:$28 sps:$4 sm:$0xff]   ;;  %v2500_v1 = vld [vmem:[#allocation6 + $0x274] ss:$28 sps:$4 sm:$0xff]  }
  0x57   :  { %1537 = vmatprep.subr.bf16.mxu1 %v2422_v2  ;;  %v2503_v2 = vld [vmem:[#allocation6 + $0x5f4] ss:$28 sps:$4 sm:$0xff]  }
  0x59   :  { %1497 = vmatpush2.bf16.msra.mxu0 %v2424_v3  ;;  %v2498_v3 = vld [vmem:[#allocation6 + $0x270] ss:$28 sps:$4 sm:$0xff]  }
  0x5a   :  { %1538 = vmatpush2.bf16.msra.mxu1 %v2425_v4  ;;  %1548 = vmatprep.subr.bf16.mxu0 %v2428_v7  ;;  %v2501_v4 = vld [vmem:[#allocation6 + $0x5f0] ss:$28 sps:$4 sm:$0xff]   ;;  %v2504_v7 = vld [vmem:[#allocation6 + $0x238] ss:$28 sps:$4 sm:$0xff]  }
  0x5b   :  { %1589 = vmatprep.subr.bf16.mxu1 %v2431_v8  ;;  %v2507_v8 = vld [vmem:[#allocation6 + $0x5b8] ss:$28 sps:$4 sm:$0xff]  }
  0x5c   :  { %1499 = vmatmul.mubr.bf16.vlgmr.msra.gmra.mxu0 %v2785_v9 }
  0x5d   :  { %1540 = vmatmul.mubr.bf16.vlgmr.msra.gmra.mxu1 %v2787_v10  ;;  %1549 = vmatpush1.bf16.msra.mxu0 %v2426_v11  ;;  %v2512_v11 = vld [vmem:[#allocation6 + $0x204] ss:$28 sps:$4 sm:$0xff]  }
  0x5e   :  { %1590 = vmatpush1.bf16.msra.mxu1 %v2429_v12  ;;  %1550 = vmatprep.subr.bf16.mxu0 %v2434_v13  ;;  %v2515_v12 = vld [vmem:[#allocation6 + $0x584] ss:$28 sps:$4 sm:$0xff]  }
  0x5f   :  { %1591 = vmatprep.subr.bf16.mxu1 %v2437_v14  ;;  %1580 = vmatprep.mubr.bf16.mxu0 %v2779_v50  ;;  %v2510_v13 = vld [vmem:[#allocation6 + $0x200] ss:$28 sps:$4 sm:$0xff]  }
  0x60   :  { %1621 = vmatprep.mubr.bf16.mxu1 %v2781_v53  ;;  %v2513_v14 = vld [vmem:[#allocation6 + $0x580] ss:$28 sps:$4 sm:$0xff]  }
  0x61   :  { %1551 = vmatpush1.bf16.msra.mxu0 %v2432_v15  ;;  %v2518_v15 = vld [vmem:[#allocation6 + $0x1cc] ss:$28 sps:$4 sm:$0xff]  }
  0x62   :  { %1592 = vmatpush1.bf16.msra.mxu1 %v2435_v16  ;;  %1552 = vmatprep.subr.bf16.mxu0 %v2440_v17  ;;  %v2521_v16 = vld [vmem:[#allocation6 + $0x54c] ss:$28 sps:$4 sm:$0xff]  }
  0x63   :  { %1593 = vmatprep.subr.bf16.mxu1 %v2443_v18  ;;  %v2516_v17 = vld [vmem:[#allocation6 + $0x1c8] ss:$28 sps:$4 sm:$0xff]  }
  0x64   :  { %v2519_v18 = vld [vmem:[#allocation6 + $0x548] ss:$28 sps:$4 sm:$0xff]  }
  0x65   :  { %1553 = vmatpush1.bf16.msra.mxu0 %v2438_v19  ;;  %v2524_v19 = vld [vmem:[#allocation6 + $0x19c] ss:$28 sps:$4 sm:$0xff]  }
  0x66   :  { %1594 = vmatpush1.bf16.msra.mxu1 %v2441_v20  ;;  %1554 = vmatprep.subr.bf16.mxu0 %v2446_v21  ;;  %v2527_v20 = vld [vmem:[#allocation6 + $0x51c] ss:$28 sps:$4 sm:$0xff]  }
  0x67   :  { %1595 = vmatprep.subr.bf16.mxu1 %v2449_v22  ;;  %v2522_v21 = vld [vmem:[#allocation6 + $0x198] ss:$28 sps:$4 sm:$0xff]  }
  0x68   :  { %v2525_v22 = vld [vmem:[#allocation6 + $0x518] ss:$28 sps:$4 sm:$0xff]  }
  0x69   :  { %1555 = vmatpush1.bf16.msra.mxu0 %v2444_v23  ;;  %v2530_v23 = vld [vmem:[#allocation6 + $0x164] ss:$28 sps:$4 sm:$0xff]  }
  0x6a   :  { %1596 = vmatpush1.bf16.msra.mxu1 %v2447_v24  ;;  %1556 = vmatprep.subr.bf16.mxu0 %v2452_v25  ;;  %v2533_v24 = vld [vmem:[#allocation6 + $0x4e4] ss:$28 sps:$4 sm:$0xff]  }
  0x6b   :  { %1597 = vmatprep.subr.bf16.mxu1 %v2455_v26  ;;  %v2528_v25 = vld [vmem:[#allocation6 + $0x160] ss:$28 sps:$4 sm:$0xff]  }
  0x6c   :  { %v2531_v26 = vld [vmem:[#allocation6 + $0x4e0] ss:$28 sps:$4 sm:$0xff]  }
  0x6d   :  { %1557 = vmatpush1.bf16.msra.mxu0 %v2450_v27  ;;  %v2536_v27 = vld [vmem:[#allocation6 + $0x12c] ss:$28 sps:$4 sm:$0xff]  }
  0x6e   :  { %1598 = vmatpush1.bf16.msra.mxu1 %v2453_v28  ;;  %1558 = vmatprep.subr.bf16.mxu0 %v2458_v29  ;;  %v2539_v28 = vld [vmem:[#allocation6 + $0x4ac] ss:$28 sps:$4 sm:$0xff]  }
  0x6f   :  { %1599 = vmatprep.subr.bf16.mxu1 %v2461_v30  ;;  %v2534_v29 = vld [vmem:[#allocation6 + $0x128] ss:$28 sps:$4 sm:$0xff]  }
  0x70   :  { %v2537_v30 = vld [vmem:[#allocation6 + $0x4a8] ss:$28 sps:$4 sm:$0xff]  }
  0x71   :  { %1559 = vmatpush1.bf16.msra.mxu0 %v2456_v31  ;;  %v2542_v31 = vld [vmem:[#allocation6 + $0xf4] ss:$28 sps:$4 sm:$0xff]  }
  0x72   :  { %1600 = vmatpush1.bf16.msra.mxu1 %v2459_v32  ;;  %1560 = vmatprep.subr.bf16.mxu0 %v2464_v33  ;;  %v2545_v32 = vld [vmem:[#allocation6 + $0x474] ss:$28 sps:$4 sm:$0xff]  }
  0x73   :  { %1601 = vmatprep.subr.bf16.mxu1 %v2467_v34  ;;  %v2540_v33 = vld [vmem:[#allocation6 + $0xf0] ss:$28 sps:$4 sm:$0xff]  }
  0x74   :  { %v2543_v34 = vld [vmem:[#allocation6 + $0x470] ss:$28 sps:$4 sm:$0xff]  }
  0x75   :  { %1561 = vmatpush1.bf16.msra.mxu0 %v2462_v35  ;;  %v2548_v35 = vld [vmem:[#allocation6 + $0xbc] ss:$28 sps:$4 sm:$0xff]  }
  0x76   :  { %1602 = vmatpush1.bf16.msra.mxu1 %v2465_v36  ;;  %1562 = vmatprep.subr.bf16.mxu0 %v2470_v37  ;;  %v2551_v36 = vld [vmem:[#allocation6 + $0x43c] ss:$28 sps:$4 sm:$0xff]  }
  0x77   :  { %1603 = vmatprep.subr.bf16.mxu1 %v2473_v38  ;;  %v2546_v37 = vld [vmem:[#allocation6 + $0xb8] ss:$28 sps:$4 sm:$0xff]  }
  0x78   :  { %v2549_v38 = vld [vmem:[#allocation6 + $0x438] ss:$28 sps:$4 sm:$0xff]  }
  0x79   :  { %1563 = vmatpush1.bf16.msra.mxu0 %v2468_v40  ;;  %v2554_v40 = vld [vmem:[#allocation6 + $0x84] ss:$28 sps:$4 sm:$0xff]  }
  0x7a   :  { %1604 = vmatpush1.bf16.msra.mxu1 %v2471_v43  ;;  %1564 = vmatprep.subr.bf16.mxu0 %v2476_v45  ;;  %v2552_v43 = vld [vmem:[#allocation6 + $0x80] ss:$28 sps:$4 sm:$0xff]   ;;  %v2560_v45 = vld [vmem:[#allocation6 + $0x4c] ss:$28 sps:$4 sm:$0xff]  }
  0x7b   :  { %1605 = vmatprep.subr.bf16.mxu1 %v2479_v46  ;;  %v2563_v46 = vld [vmem:[#allocation6 + $0x3cc] ss:$28 sps:$4 sm:$0xff]  }
  0x7d   :  { %1565 = vmatpush2.bf16.msra.mxu0 %v2474_v47  ;;  %v2558_v47 = vld [vmem:[#allocation6 + $0x48] ss:$28 sps:$4 sm:$0xff]  }
  0x7e   :  { %1606 = vmatpush2.bf16.msra.mxu1 %v2477_v51  ;;  %1566 = vmatprep.subr.bf16.mxu0 %v2482_v52  ;;  %v2569_v51 = vld [vmem:[#allocation6 + $0x394] ss:$28 sps:$4 sm:$0xff]  }
  0x7f   :  { %1607 = vmatprep.subr.bf16.mxu1 %v2485_v54  ;;  %v2564_v52 = vld [vmem:[#allocation6 + $0x10] ss:$28 sps:$4 sm:$0xff]  }
  0x80   :  { %v2567_v54 = vld [vmem:[#allocation6 + $0x390] ss:$28 sps:$4 sm:$0xff]  }
  0x81   :  { %1567 = vmatpush2.bf16.msra.mxu0 %v2480_v55  ;;  %v2572_v55 = vld [vmem:[#allocation6 + $0x35c] ss:$28 sps:$4 sm:$0xff]  }
  0x82   :  { %1608 = vmatpush2.bf16.msra.mxu1 %v2483_v56  ;;  %1568 = vmatprep.subr.bf16.mxu0 %v2488_v57  ;;  %v2575_v56 = vld [vmem:[#allocation6 + $0x6dc] ss:$28 sps:$4 sm:$0xff]  }
  0x83   :  { %1609 = vmatprep.subr.bf16.mxu1 %v2491_v58  ;;  %v2570_v57 = vld [vmem:[#allocation6 + $0x358] ss:$28 sps:$4 sm:$0xff]  }
  0x84   :  { %v2573_v58 = vld [vmem:[#allocation6 + $0x6d8] ss:$28 sps:$4 sm:$0xff]  }
  0x85   :  { %1569 = vmatpush2.bf16.msra.mxu0 %v2486_v59  ;;  %v2578_v59 = vld [vmem:[#allocation6 + $0x324] ss:$28 sps:$4 sm:$0xff]  }
  0x86   :  { %1610 = vmatpush2.bf16.msra.mxu1 %v2489_v60  ;;  %1570 = vmatprep.subr.bf16.mxu0 %v2494_v61  ;;  %v2581_v60 = vld [vmem:[#allocation6 + $0x6a4] ss:$28 sps:$4 sm:$0xff]  }
  0x87   :  { %1611 = vmatprep.subr.bf16.mxu1 %v2497_v62  ;;  %v2576_v61 = vld [vmem:[#allocation6 + $0x320] ss:$28 sps:$4 sm:$0xff]  }
  0x88   :  { %v2579_v62 = vld [vmem:[#allocation6 + $0x6a0] ss:$28 sps:$4 sm:$0xff]  }
  0x89   :  { %1571 = vmatpush2.bf16.msra.mxu0 %v2492_v63  ;;  %v2584_v63 = vld [vmem:[#allocation6 + $0x2ec] ss:$28 sps:$4 sm:$0xff]  }
  0x8a   :  { %1612 = vmatpush2.bf16.msra.mxu1 %v2495_v0  ;;  %1572 = vmatprep.subr.bf16.mxu0 %v2500_v1  ;;  %v2587_v0 = vld [vmem:[#allocation6 + $0x66c] ss:$28 sps:$4 sm:$0xff]  }
  0x8b   :  { %1613 = vmatprep.subr.bf16.mxu1 %v2503_v2  ;;  %v2582_v1 = vld [vmem:[#allocation6 + $0x2e8] ss:$28 sps:$4 sm:$0xff]  }
  0x8c   :  { %v2585_v2 = vld [vmem:[#allocation6 + $0x668] ss:$28 sps:$4 sm:$0xff]  }
  0x8d   :  { %1573 = vmatpush2.bf16.msra.mxu0 %v2498_v3  ;;  %v2590_v3 = vld [vmem:[#allocation6 + $0x2b4] ss:$28 sps:$4 sm:$0xff]  }
  0x8e   :  { %1614 = vmatpush2.bf16.msra.mxu1 %v2501_v4  ;;  %1574 = vmatprep.subr.bf16.mxu0 %v2506_v5  ;;  %v2593_v4 = vld [vmem:[#allocation6 + $0x634] ss:$28 sps:$4 sm:$0xff]  }
  0x8f   :  { %1615 = vmatprep.subr.bf16.mxu1 %v2509_v6  ;;  %v2588_v5 = vld [vmem:[#allocation6 + $0x2b0] ss:$28 sps:$4 sm:$0xff]  }
  0x90   :  { %v2591_v6 = vld [vmem:[#allocation6 + $0x630] ss:$28 sps:$4 sm:$0xff]  }
  0x91   :  { %1575 = vmatpush2.bf16.msra.mxu0 %v2504_v7  ;;  %v2596_v7 = vld [vmem:[#allocation6 + $0x27c] ss:$28 sps:$4 sm:$0xff]  }
  0x92   :  { %1616 = vmatpush2.bf16.msra.mxu1 %v2507_v8  ;;  %1576 = vmatprep.subr.bf16.mxu0 %v2512_v11  ;;  %v2599_v8 = vld [vmem:[#allocation6 + $0x5fc] ss:$28 sps:$4 sm:$0xff]  }
  0x93   :  { %1617 = vmatprep.subr.bf16.mxu1 %v2515_v12  ;;  %v2594_v11 = vld [vmem:[#allocation6 + $0x278] ss:$28 sps:$4 sm:$0xff]  }
  0x94   :  { %v2597_v12 = vld [vmem:[#allocation6 + $0x5f8] ss:$28 sps:$4 sm:$0xff]  }
  0x95   :  { %1577 = vmatpush2.bf16.msra.mxu0 %v2510_v13  ;;  %v2602_v13 = vld [vmem:[#allocation6 + $0x244] ss:$28 sps:$4 sm:$0xff]  }
  0x96   :  { %1618 = vmatpush2.bf16.msra.mxu1 %v2513_v14  ;;  %1578 = vmatprep.subr.bf16.mxu0 %v2518_v15  ;;  %v2605_v14 = vld [vmem:[#allocation6 + $0x5c4] ss:$28 sps:$4 sm:$0xff]  }
  0x97   :  { %1619 = vmatprep.subr.bf16.mxu1 %v2521_v16  ;;  %v2600_v15 = vld [vmem:[#allocation6 + $0x240] ss:$28 sps:$4 sm:$0xff]  }
  0x98   :  { %v2603_v16 = vld [vmem:[#allocation6 + $0x5c0] ss:$28 sps:$4 sm:$0xff]  }
  0x99   :  { %1579 = vmatpush2.bf16.msra.mxu0 %v2516_v17  ;;  %v2608_v17 = vld [vmem:[#allocation6 + $0x20c] ss:$28 sps:$4 sm:$0xff]  }
  0x9a   :  { %1620 = vmatpush2.bf16.msra.mxu1 %v2519_v18  ;;  %1630 = vmatprep.subr.bf16.mxu0 %v2524_v19  ;;  %v2611_v18 = vld [vmem:[#allocation6 + $0x58c] ss:$28 sps:$4 sm:$0xff]  }
  0x9b   :  { %1671 = vmatprep.subr.bf16.mxu1 %v2527_v20  ;;  %v2606_v19 = vld [vmem:[#allocation6 + $0x208] ss:$28 sps:$4 sm:$0xff]  }
  0x9c   :  { %1581 = vmatmul.mubr.bf16.vlgmr.msra.gmra.mxu0 %v2785_v9  ;;  %v2609_v20 = vld [vmem:[#allocation6 + $0x588] ss:$28 sps:$4 sm:$0xff]  }
  0x9d   :  { %1622 = vmatmul.mubr.bf16.vlgmr.msra.gmra.mxu1 %v2787_v10  ;;  %1631 = vmatpush1.bf16.msra.mxu0 %v2522_v21  ;;  %v2614_v21 = vld [vmem:[#allocation6 + $0x1d4] ss:$28 sps:$4 sm:$0xff]  }
  0x9e   :  { %1672 = vmatpush1.bf16.msra.mxu1 %v2525_v22  ;;  %1632 = vmatprep.subr.bf16.mxu0 %v2530_v23  ;;  %v2617_v22 = vld [vmem:[#allocation6 + $0x554] ss:$28 sps:$4 sm:$0xff]  }
  0x9f   :  { %1673 = vmatprep.subr.bf16.mxu1 %v2533_v24  ;;  %1662 = vmatprep.mubr.bf16.mxu0 %v2779_v50  ;;  %v2612_v23 = vld [vmem:[#allocation6 + $0x1d0] ss:$28 sps:$4 sm:$0xff]  }
  0xa0   :  { %1703 = vmatprep.mubr.bf16.mxu1 %v2781_v53  ;;  %v2615_v24 = vld [vmem:[#allocation6 + $0x550] ss:$28 sps:$4 sm:$0xff]  }
  0xa1   :  { %1633 = vmatpush1.bf16.msra.mxu0 %v2528_v25  ;;  %v2618_v25 = vld [vmem:[#allocation6 + $0x360] ss:$28 sps:$4 sm:$0xff]  }
  0xa2   :  { %1674 = vmatpush1.bf16.msra.mxu1 %v2531_v26  ;;  %1634 = vmatprep.subr.bf16.mxu0 %v2536_v27  ;;  %v2619_v26 = vld [vmem:[#allocation6 + $0x6e0] ss:$28 sps:$4 sm:$0xff]  }
  0xa3   :  { %1675 = vmatprep.subr.bf16.mxu1 %v2539_v28  ;;  %v2620_v27 = vld [vmem:[#allocation6 + $0x1a0] ss:$28 sps:$4 sm:$0xff]  }
  0xa4   :  { %v2621_v28 = vld [vmem:[#allocation6 + $0x520] ss:$28 sps:$4 sm:$0xff]  }
  0xa5   :  { %1635 = vmatpush1.bf16.msra.mxu0 %v2534_v29  ;;  %v2622_v29 = vld [vmem:[#allocation6 + $0x328] ss:$28 sps:$4 sm:$0xff]  }
  0xa6   :  { %1676 = vmatpush1.bf16.msra.mxu1 %v2537_v30  ;;  %1636 = vmatprep.subr.bf16.mxu0 %v2542_v31  ;;  %v2623_v30 = vld [vmem:[#allocation6 + $0x6a8] ss:$28 sps:$4 sm:$0xff]  }
  0xa7   :  { %1677 = vmatprep.subr.bf16.mxu1 %v2545_v32  ;;  %v2624_v31 = vld [vmem:[#allocation6 + $0x168] ss:$28 sps:$4 sm:$0xff]  }
  0xa8   :  { %v2625_v32 = vld [vmem:[#allocation6 + $0x4e8] ss:$28 sps:$4 sm:$0xff]  }
  0xa9   :  { %1637 = vmatpush1.bf16.msra.mxu0 %v2540_v33  ;;  %v2626_v33 = vld [vmem:[#allocation6 + $0x2f0] ss:$28 sps:$4 sm:$0xff]  }
  0xaa   :  { %1678 = vmatpush1.bf16.msra.mxu1 %v2543_v34  ;;  %1638 = vmatprep.subr.bf16.mxu0 %v2548_v35  ;;  %v2627_v34 = vld [vmem:[#allocation6 + $0x670] ss:$28 sps:$4 sm:$0xff]  }
  0xab   :  { %1679 = vmatprep.subr.bf16.mxu1 %v2551_v36  ;;  %v2628_v35 = vld [vmem:[#allocation6 + $0x130] ss:$28 sps:$4 sm:$0xff]  }
  0xac   :  { %v2629_v36 = vld [vmem:[#allocation6 + $0x4b0] ss:$28 sps:$4 sm:$0xff]  }
  0xad   :  { %1639 = vmatpush1.bf16.msra.mxu0 %v2546_v37  ;;  %v2630_v37 = vld [vmem:[#allocation6 + $0x2b8] ss:$28 sps:$4 sm:$0xff]  }
  0xae   :  { %1680 = vmatpush1.bf16.msra.mxu1 %v2549_v38  ;;  %1640 = vmatprep.subr.bf16.mxu0 %v2554_v40  ;;  %v2631_v38 = vld [vmem:[#allocation6 + $0x638] ss:$28 sps:$4 sm:$0xff]  }
  0xaf   :  { %1681 = vmatprep.subr.bf16.mxu1 %v2557_v42  ;;  %v2632_v40 = vld [vmem:[#allocation6 + $0xf8] ss:$28 sps:$4 sm:$0xff]  }
  0xb0   :  { %v2633_v42 = vld [vmem:[#allocation6 + $0x478] ss:$28 sps:$4 sm:$0xff]  }
  0xb1   :  { %1641 = vmatpush1.bf16.msra.mxu0 %v2552_v43  ;;  %v2634_v43 = vld [vmem:[#allocation6 + $0x280] ss:$28 sps:$4 sm:$0xff]  }
  0xb2   :  { %1682 = vmatpush1.bf16.msra.mxu1 %v2555_v44  ;;  %1642 = vmatprep.subr.bf16.mxu0 %v2560_v45  ;;  %v2635_v44 = vld [vmem:[#allocation6 + $0x600] ss:$28 sps:$4 sm:$0xff]   ;;  %v2638_v45 = vld [vmem:[#allocation6 + $0x248] ss:$28 sps:$4 sm:$0xff]  }
  0xb3   :  { %1683 = vmatprep.subr.bf16.mxu1 %v2563_v46  ;;  %v2639_v46 = vld [vmem:[#allocation6 + $0x5c8] ss:$28 sps:$4 sm:$0xff]  }
  0xb5   :  { %1643 = vmatpush1.bf16.msra.mxu0 %v2558_v47  ;;  %v2640_v47 = vld [vmem:[#allocation6 + $0x88] ss:$28 sps:$4 sm:$0xff]  }
  0xb6   :  { %1684 = vmatpush1.bf16.msra.mxu1 %v2561_v48  ;;  %1644 = vmatprep.subr.bf16.mxu0 %v2566_v49  ;;  %v2641_v48 = vld [vmem:[#allocation6 + $0x408] ss:$28 sps:$4 sm:$0xff]   ;;  %v2642_v49 = vld [vmem:[#allocation6 + $0x210] ss:$28 sps:$4 sm:$0xff]  }
  0xb7   :  { %1685 = vmatprep.subr.bf16.mxu1 %v2569_v51  ;;  %v2643_v51 = vld [vmem:[#allocation6 + $0x590] ss:$28 sps:$4 sm:$0xff]  }
  0xb9   :  { %1645 = vmatpush1.bf16.msra.mxu0 %v2564_v52  ;;  %v2644_v52 = vld [vmem:[#allocation6 + $0x50] ss:$28 sps:$4 sm:$0xff]  }
  0xba   :  { %1686 = vmatpush1.bf16.msra.mxu1 %v2567_v54  ;;  %1646 = vmatprep.subr.bf16.mxu0 %v2572_v55  ;;  %v2645_v54 = vld [vmem:[#allocation6 + $0x3d0] ss:$28 sps:$4 sm:$0xff]   ;;  %v2646_v55 = vld [vmem:[#allocation6 + $0x1d8] ss:$28 sps:$4 sm:$0xff]  }
  0xbb   :  { %1687 = vmatprep.subr.bf16.mxu1 %v2575_v56  ;;  %v2647_v56 = vld [vmem:[#allocation6 + $0x558] ss:$28 sps:$4 sm:$0xff]  }
  0xbd   :  { %1647 = vmatpush2.bf16.msra.mxu0 %v2570_v57  ;;  %v2648_v57 = vld [vmem:[#allocation6 + $0x18] ss:$28 sps:$4 sm:$0xff]  }
  0xbe   :  { %1688 = vmatpush2.bf16.msra.mxu1 %v2573_v58  ;;  %1648 = vmatprep.subr.bf16.mxu0 %v2578_v59  ;;  %v2649_v58 = vld [vmem:[#allocation6 + $0x398] ss:$28 sps:$4 sm:$0xff]  }
  0xbf   :  { %1689 = vmatprep.subr.bf16.mxu1 %v2581_v60 }
  0xc1   :  { %1649 = vmatpush2.bf16.msra.mxu0 %v2576_v61 }
  0xc2   :  { %1690 = vmatpush2.bf16.msra.mxu1 %v2579_v62  ;;  %1650 = vmatprep.subr.bf16.mxu0 %v2584_v63 }
  0xc3   :  { %1691 = vmatprep.subr.bf16.mxu1 %v2587_v0 }
  0xc5   :  { %1651 = vmatpush2.bf16.msra.mxu0 %v2582_v1 }
  0xc6   :  { %1692 = vmatpush2.bf16.msra.mxu1 %v2585_v2  ;;  %1652 = vmatprep.subr.bf16.mxu0 %v2590_v3 }
  0xc7   :  { %1693 = vmatprep.subr.bf16.mxu1 %v2593_v4 }
  0xc9   :  { %1653 = vmatpush2.bf16.msra.mxu0 %v2588_v5 }
  0xca   :  { %1694 = vmatpush2.bf16.msra.mxu1 %v2591_v6  ;;  %1654 = vmatprep.subr.bf16.mxu0 %v2596_v7 }
  0xcb   :  { %1695 = vmatprep.subr.bf16.mxu1 %v2599_v8 }
  0xcd   :  { %1655 = vmatpush2.bf16.msra.mxu0 %v2594_v11 }
  0xce   :  { %1696 = vmatpush2.bf16.msra.mxu1 %v2597_v12  ;;  %1656 = vmatprep.subr.bf16.mxu0 %v2602_v13 }
  0xcf   :  { %1697 = vmatprep.subr.bf16.mxu1 %v2605_v14 }
  0xd1   :  { %1657 = vmatpush2.bf16.msra.mxu0 %v2600_v15 }
  0xd2   :  { %1698 = vmatpush2.bf16.msra.mxu1 %v2603_v16  ;;  %1658 = vmatprep.subr.bf16.mxu0 %v2608_v17 }
  0xd3   :  { %1699 = vmatprep.subr.bf16.mxu1 %v2611_v18 }
  0xd5   :  { %1659 = vmatpush2.bf16.msra.mxu0 %v2606_v19 }
  0xd6   :  { %1700 = vmatpush2.bf16.msra.mxu1 %v2609_v20  ;;  %1660 = vmatprep.subr.bf16.mxu0 %v2614_v21 }
  0xd7   :  { %1701 = vmatprep.subr.bf16.mxu1 %v2617_v22 }
  0xd9   :  { %1661 = vmatpush2.bf16.msra.mxu0 %v2612_v23 }
  0xda   :  { %1702 = vmatpush2.bf16.msra.mxu1 %v2615_v24  ;;  %2264 = vmatprep.subr.bf16.mxu0 %v2618_v25  ;;  %v2828_v25 = vpop.permute.xlu0 %1822 }
  0xdb   :  { %2286 = vmatprep.subr.bf16.mxu1 %v2619_v26 }
  0xdc   :  { %1663 = vmatmul.mubr.bf16.vlgmr.msra.gmra.mxu0 %v2785_v9 }
  0xdd   :  { %1704 = vmatmul.mubr.bf16.vlgmr.msra.gmra.mxu1 %v2787_v10  ;;  %2265 = vmatpush3.bf16.msra.mxu0 %v2620_v27 }
  0xde   :  { %2287 = vmatpush3.bf16.msra.mxu1 %v2621_v28  ;;  %2266 = vmatprep.subr.bf16.mxu0 %v2622_v29 }
  0xdf   :  { %2288 = vmatprep.subr.bf16.mxu1 %v2623_v30  ;;  %1744 = vmatprep.mubr.bf16.mxu0 %v2779_v50  ;;  %v2636_v50 = vld [vmem:[#allocation6 + $0xc0] ss:$28 sps:$4 sm:$0xff]  }
  0xe0   :  { %1784 = vmatprep.mubr.bf16.mxu1 %v2781_v53  ;;  %v2637_v53 = vld [vmem:[#allocation6 + $0x440] ss:$28 sps:$4 sm:$0xff]  }
  0xe1   :  { %2267 = vmatpush3.bf16.msra.mxu0 %v2624_v31 }
  0xe2   :  { %2289 = vmatpush3.bf16.msra.mxu1 %v2625_v32  ;;  %2268 = vmatprep.subr.bf16.mxu0 %v2626_v33 }
  0xe3   :  { %2290 = vmatprep.subr.bf16.mxu1 %v2627_v34  ;;  %v2830_v34 = vpop.permute.xlu0 %1812 }
  0xe5   :  { %2269 = vmatpush3.bf16.msra.mxu0 %v2628_v35 }
  0xe6   :  { %2291 = vmatpush3.bf16.msra.mxu1 %v2629_v36  ;;  %2270 = vmatprep.subr.bf16.mxu0 %v2630_v37 }
  0xe7   :  { %2292 = vmatprep.subr.bf16.mxu1 %v2631_v38 }
  0xe9   :  { %2271 = vmatpush3.bf16.msra.mxu0 %v2632_v40 }
  0xea   :  { %2293 = vmatpush3.bf16.msra.mxu1 %v2633_v42  ;;  %2272 = vmatprep.subr.bf16.mxu0 %v2634_v43  ;;  %v2834_v42 = vpop.permute.xlu1 %1817 }
  0xeb   :  { %2294 = vmatprep.subr.bf16.mxu1 %v2635_v44 }
  0xed   :  { %2273 = vmatpush3.bf16.msra.mxu0 %v2636_v50 }
  0xee   :  { %2295 = vmatpush3.bf16.msra.mxu1 %v2637_v53  ;;  %2274 = vmatprep.subr.bf16.mxu0 %v2638_v45  ;;  %v2837_v44 = vpop.permute.xlu1 %1827 }
  0xef   :  { %2296 = vmatprep.subr.bf16.mxu1 %v2639_v46 }
  0xf1   :  { %2275 = vmatpush3.bf16.msra.mxu0 %v2640_v47 }
  0xf2   :  { %2297 = vmatpush3.bf16.msra.mxu1 %v2641_v48  ;;  %2276 = vmatprep.subr.bf16.mxu0 %v2642_v49 }
  0xf3   :  { %2298 = vmatprep.subr.bf16.mxu1 %v2643_v51 }
  0xf5   :  { %2277 = vmatpush3.bf16.msra.mxu0 %v2644_v52 }
  0xf6   :  { %2299 = vmatpush3.bf16.msra.mxu1 %v2645_v54  ;;  %2278 = vmatprep.subr.bf16.mxu0 %v2646_v55 }
  0xf7   :  { %2300 = vmatprep.subr.bf16.mxu1 %v2647_v56 }
  0xf9   :  { %2279 = vmatpush3.bf16.msra.mxu0 %v2648_v57 }
  0xfa   :  { %2301 = vmatpush3.bf16.msra.mxu1 %v2649_v58 }
  0xfc   :  { %1745 = vmatmul.mubr.bf16.vlgmr.msra.gmra.mxu0 %v2785_v9 }
  0xfd   :  { %1785 = vmatmul.mubr.bf16.vlgmr.msra.gmra.mxu1 %v2787_v10 }
 0x11c   :  { %v1500_v59 = vpop.f32.mrf.mxu0 }
 0x11d   :  { %v1541_v60 = vpop.f32.mrf.mxu1 }
 0x11e   :  { %v2816_v61 = vadd.f32 %v1541_v60, %v1500_v59  ;;  %v1502_v62 = vpop.f32.mrf.mxu0 }
 0x11f   :  { %v1543_v63 = vpop.f32.mrf.mxu1 }
 0x120   :  { %v2818_v0 = vadd.f32 %v1543_v63, %v1502_v62  ;;  %v1504_v1 = vpop.f32.mrf.mxu0 }
 0x121   :  { %v1545_v2 = vpop.f32.mrf.mxu1 }
 0x122   :  { %v1505_v3 = vpop.f32.mrf.mxu0 }
 0x123   :  { %v1546_v4 = vpop.f32.mrf.mxu1 }
 0x124   :  { %v51_v4 = vld [vmem:[#allocation3 + $0x28] sm:$0xff] }
 0x15c   :  { %v1582_v5 = vpop.f32.mrf.mxu0 }
 0x15d   :  { %v1623_v6 = vpop.f32.mrf.mxu1 }
 0x15e   :  { %v2820_v7 = vadd.f32 %v1623_v6, %v1582_v5  ;;  %v1584_v8 = vpop.f32.mrf.mxu0  ;;  %v1900_v6 = vstv %s2874_s0  ;;  %s2742_s0 = smov 126  }
 0x15f   :  { %v1625_v9 = vpop.f32.mrf.mxu1 }
 0x160   :  { %v2822_v11 = vadd.f32 %v1625_v9, %v1584_v8  ;;  %v1586_v10 = vpop.f32.mrf.mxu0 }
 0x161   :  { %v1627_v12 = vpop.f32.mrf.mxu1 }
 0x162   :  { %v1587_v13 = vpop.f32.mrf.mxu0 }
 0x163   :  { %v1628_v14 = vpop.f32.mrf.mxu1 }
 0x19c   :  { %v1664_v15 = vpop.f32.mrf.mxu0 }
 0x19d   :  { %v1705_v16 = vpop.f32.mrf.mxu1 }
 0x19e   :  { %v2824_v17 = vadd.f32 %v1705_v16, %v1664_v15  ;;  %v1666_v18 = vpop.f32.mrf.mxu0 }
 0x19f   :  { %v1707_v19 = vpop.f32.mrf.mxu1 }
 0x1a0   :  { %v2826_v20 = vadd.f32 %v1707_v19, %v1666_v18  ;;  %v1668_v21 = vpop.f32.mrf.mxu0 }
 0x1a1   :  { %v1709_v22 = vpop.f32.mrf.mxu1  ;;  %v2258_v21 = vsel %vm1804_vm5, 1.0, %v2738_v41 }
 0x1a2   :  { %v1669_v23 = vpop.f32.mrf.mxu0  ;;  %v2259_v22 = vsel %vm1807_vm6, 1.0, %v2738_v41 }
 0x1a3   :  { %v1710_v24 = vpop.f32.mrf.mxu1 }
 0x1a4   :  { %v2325_v24 = vpack.i.bf16 %v2259_v22, %v2258_v21 }
 0x1bc   :  { %v2280_v26 = vpop.f32.mrf.mxu0 }
 0x1bd   :  { %v2302_v27 = vpop.f32.mrf.mxu1 }
 0x1be   :  { %v2281_v28 = vpop.f32.mrf.mxu0 }
 0x1bf   :  { %v2303_v29 = vpop.f32.mrf.mxu1  ;;  %v2282_v30 = vadd.f32 %v2281_v28, %v2280_v26  ;;  %v2664_v26 = vld [vmem:[%s2876_s2] sm:$0xff]  ;;  %s2745_s2 = smov 2  }
 0x1c0   :  { %v2304_v31 = vadd.f32 %v2303_v29, %v2302_v27  ;;  %v2283_v32 = vpop.f32.mrf.mxu0  ;;  %vm1916_vm7 = vcmp.ne.s32.totalorder %v2664_v26, 1  ;;  %vm1913_vm8 = vcmp.ne.s32.totalorder %v2664_v26, 0 }
 0x1c1   :  { %v2305_v33 = vpop.f32.mrf.mxu1  ;;  %v2262_v39 = vsel %vm1916_vm7, 1.0, %v2738_v41  ;;  %v2261_v27 = vsel %vm1913_vm8, 1.0, %v2738_v41 }
 0x1c2   :  { %v1787_v35 = vadd.f32 %v2304_v31, %v2282_v30  ;;  %v2284_v36 = vpop.f32.mrf.mxu0  ;;  %v1920_v28 = vmul.f32 %v2262_v39, %v2261_v27 }
 0x1c3   :  { %v2306_v37 = vpop.f32.mrf.mxu1 }
 0x1c4   :  { %v1867_v38 = vmul.f32 %v2830_v34, %v1787_v35  ;;  %v1861_v40 = vmul.f32 %v2828_v25, %v1787_v35  ;;  %v1873_v43 = vmul.f32 %v2834_v42, %v1787_v35  ;;  %v1860_v50 = vmul.f32 %v2837_v44, %v1787_v35 }
 0x1c6   :  { %1869 = vrot.lane.b32.xlu1 %v1867_v38, %s2739_s27  ;;  %1863 = vrot.lane.b32.xlu0 %v1861_v40, %s2740_s28 }
 0x1ca   :  { %1875 = vrot.lane.b32.xlu0 %v1873_v43, %s2741_s29 }
 0x238   :  { %v1864_v53 = vpop.permute.xlu0 %1863  ;;  %v1870_v46 = vpop.permute.xlu1 %1869 }
 0x239   :  { %v1866_v45 = vadd.f32 %v1864_v53, %v1860_v50 }
 0x23b   :  { %v1872_v47 = vadd.f32 %v1870_v46, %v1866_v45 }
 0x23c   :  { %v1876_v48 = vpop.permute.xlu0 %1875 }
 0x23d   :  { %v1878_v49 = vadd.f32 %v1876_v48, %v1872_v47  ;;  %v1981_v47 = vcvt.s32.f32 %v2664_v26 }
 0x23f   :  { %v2260_v51 = vmul.f32 -1.442695, %v1878_v49  ;;  %v2263_v41 = vadd.f32 -1.0, %v1981_v47 }
 0x241   :  { %2650 = vpow2.f32 %v2260_v51 }
 0x24e   :  { %v2651_v52 = vpop.eup %2650 }
 0x24f   :  { %v1882_v54 = vadd.f32 1.0, %v2651_v52 }
 0x251   :  { %2652 = vrcp.f32 %v1882_v54 }
 0x25e   :  { %v2653_v55 = vpop.eup %2652 }
 0x25f   :  { %v1886_v56 = vsel %vm1885_vm4, %v2653_v55, -inf }
 0x260   :  { %1887 = vmax.xlane.f32.xlu1 %v1886_v56 }
 0x2e9   :  { %v1888_v57 = vpop.xlane.xlu1 %1887 }
 0x2ea   :  { %v1889_v58 = vsub.f32 %v2653_v55, %v1888_v57 }
 0x2ec   :  { %v1890_v59 = vmul.f32 1.442695, %v1889_v58  ;;  %v1989_v58 = vadd.f32 1.0, %v1981_v47 }
 0x2ee   :  { %2654 = vpow2.f32 %v1890_v59 }
 0x2fb   :  { %v2655_v60 = vpop.eup %2654 }
 0x2fc   :  { %v1892_v62 = vsel %vm1885_vm4, %v2655_v60, 0.0 }
 0x2fd   :  { %1893 = vadd.xlane.f32.xlu0 %v1892_v62 }
 0x386   :  { %v1894_v63 = vpop.xlane.xlu0 %1893 }
 0x387   :  { %2656 = vlog2.f32 %v1894_v63 }
 0x394   :  { %v2657_v1 = vpop.eup %2656 }
 0x395   :  { %v1896_v2 = vmul.f32 0.6931472, %v2657_v1 }
 0x397   :  { %v1897_v3 = vadd.f32 %v1896_v2, %v1888_v57 }
 0x399   :  { %v1898_v5 = vsub.f32 %v2653_v55, %v1897_v3 }
 0x39b   :  { %v1899_v8 = vadd.f32 %v1898_v5, %v51_v4 }
 0x39d   :  { %v1901_v9 = vmul.f32 %v1900_v6, %v1899_v8 }
 0x39f   :  { %v1902_v10 = vsel %vm1885_vm4, %v1901_v9, -inf }
 0x3a0   :  { %1903 = vmax.xlane.f32.xlu0 %v1902_v10 }
 0x429   :  { %v1904_v12 = vpop.xlane.xlu0 %1903 }
 0x42a   :  { %v1905_v13 = vsub.f32 %v1901_v9, %v1904_v12  ;;  %v50_v12 = vld [vmem:[#allocation3 + $0x20] sm:$0xff] }
 0x42c   :  { %v1906_v14 = vmul.f32 1.442695, %v1905_v13  ;;  %v2665_v13 = vld [vmem:[#allocation3 + $0x10] sm:$0xff] }
 0x42d   :  { %v1843_v26 = vmul.f32 %v2665_v13, %v2828_v25 }
 0x42e   :  { %2658 = vpow2.f32 %v1906_v14  ;;  %v1841_v14 = vmul.f32 %v2665_v13, %v2834_v42 }
 0x43b   :  { %v2659_v15 = vpop.eup %2658 }
 0x43c   :  { %v1908_v16 = vsel %vm1885_vm4, %v2659_v15, 0.0 }
 0x43d   :  { %1909 = vadd.xlane.f32.xlu1 %v1908_v16 }
 0x4c6   :  { %v1910_v18 = vpop.xlane.xlu1 %1909 }
 0x4c7   :  { %2660 = vrcp.f32 %v1910_v18  ;;  %v1849_v18 = vmul.f32 %v2830_v34, %v2822_v11 }
 0x4d4   :  { %v2661_v19 = vpop.eup %2660 }
 0x4d5   :  { %v1912_v23 = vmul.f32 %v2661_v19, %v2659_v15  ;;  %v2666_v15 = vld [vmem:[#allocation3 + $0x18] sm:$0xff]  ;;  %v1840_v19 = vmul.f32 %v2830_v34, %v2816_v61  ;;  %v1852_v61 = vmul.f32 %v2830_v34, %v2820_v7 }
 0x4d6   :  { %v1850_v16 = vmul.f32 %v2666_v15, %v2834_v42  ;;  %v1854_v42 = vmul.f32 %v2837_v44, %v2824_v17 }
 0x4d7   :  { %1926 = vrot.lane.b32.xlu1 %v1912_v23, %s2742_s0  ;;  %1922 = vrot.lane.b32.xlu0 %v1912_v23, %s2743_s6  ;;  %v1919_v29 = vmul.f32 %v2261_v27, %v1912_v23 }
 0x4d9   :  { %v1934_v35 = vmul.f32 %v1919_v29, %v1919_v29 }
 0x4db   :  { %1930 = vrot.lane.b32.xlu1 %v1912_v23, %s2744_s7  ;;  %2326 = vperm.xlu0 %2323, %v2325_v24  }
 0x549   :  { %v1927_v30 = vpop.permute.xlu1 %1926  ;;  %v1923_v31 = vpop.permute.xlu0 %1922 }
 0x54a   :  { %v1929_v32 = vmul.f32 %v2262_v39, %v1927_v30  ;;  %v1925_v33 = vmul.f32 %v1923_v31, %v1920_v28  ;;  %v1855_v39 = vmul.f32 %v2666_v15, %v2828_v25  ;;  %v1842_v28 = vadd.f32 %v1841_v14, %v1840_v19 }
 0x54b   :  { %v1851_v30 = vadd.f32 %v1850_v16, %v1849_v18 }
 0x54c   :  { %v1935_v36 = vmul.f32 %v1925_v33, %v1925_v33  ;;  %v1937_v38 = vmul.f32 %v1929_v32, %v1929_v32 }
 0x54d   :  { %v1931_v37 = vpop.permute.xlu1 %1930 }
 0x54e   :  { %v1936_v40 = vadd.f32 %v1935_v36, %v1934_v35  ;;  %v1933_v43 = vmul.f32 %v2261_v27, %v1931_v37  ;;  %v1844_v27 = vmul.f32 %v2837_v44, %v2818_v0 }
 0x550   :  { %v1938_v50 = vadd.f32 %v1937_v38, %v1936_v40  ;;  %v1939_v53 = vmul.f32 %v1933_v43, %v1933_v43  ;;  %v1845_v37 = vadd.f32 %v1844_v27, %v1843_v26  ;;  %v1856_v38 = vadd.f32 %v1855_v39, %v1854_v42 }
 0x552   :  { %v1940_v45 = vadd.f32 %v1939_v53, %v1938_v50  ;;  %v1853_v50 = vadd.f32 %v1852_v61, %v1850_v16 }
 0x554   :  { %v1941_v46 = vmax.f32 %v1940_v45, 1e-24 }
 0x556   :  { %2662 = vrsqrt.f32 %v1941_v46  ;;  %v2327_v8 = vpop.permute.xlu0 %2326 }
 0x557   :  { %v2329_v9 = vunpack.i.h.bf16 %v2327_v8  ;;  %v2328_v10 = vunpack.i.l.bf16 %v2327_v8 }
 0x559   :  { %v1847_v21 = vmul.f32 %v2665_v13, %v2329_v9  ;;  %v1858_v22 = vmul.f32 %v2666_v15, %v2329_v9  ;;  %v1846_v23 = vmul.f32 %v2328_v10, %v50_v12  ;;  %v1857_v24 = vmul.f32 %v2328_v10, %v2826_v20 }
 0x55b   :  { %v1848_v11 = vadd.f32 %v1847_v21, %v1846_v23 }
 0x563   :  { %v2663_v48 = vpop.eup %2662 }
 0x564   :  { %v1946_v49 = vmul.f32 %v2663_v48, %v1933_v43  ;;  %v1944_v51 = vmul.f32 %v2663_v48, %v1925_v33  ;;  %v1943_v52 = vmul.f32 %v2663_v48, %v1919_v29  ;;  %v1945_v54 = vmul.f32 %v2663_v48, %v1929_v32 }
 0x565   :  { %v1859_v29 = vadd.f32 %v1858_v22, %v1857_v24 }
 0x566   :  { %1954 = vperm.xlu0 %2323, %v1944_v51   ;;  %v1984_v55 = vfloor.f32 %v1944_v51  ;;  %1949 = vperm.xlu1 %2324, %v1943_v52   ;;  %v1982_v56 = vfloor.f32 %v1943_v52  ;;  %v1988_v57 = vfloor.f32 %v1945_v54  ;;  %v1992_v62 = vfloor.f32 %v1946_v49 }
 0x567   :  { %v1996_v2 = vadd.f32 %v1946_v49, %v1944_v51  ;;  %v1995_v3 = vadd.f32 %v1946_v49, %v1945_v54 }
 0x568   :  { %v1986_v59 = vmul.f32 %v2263_v41, %v1984_v55  ;;  %v1983_v60 = vmul.f32 %v1982_v56, %v1981_v47  ;;  %v1990_v1 = vmul.f32 %v1989_v58, %v1988_v57  ;;  %v1993_v4 = vmul.f32 %v1992_v62, %v1981_v47 }
 0x56a   :  { %v1987_v63 = vadd.f32 %v1986_v59, %v1983_v60  ;;  %1964 = vperm.xlu0 %2323, %v1946_v49   ;;  %1959 = vperm.xlu1 %2324, %v1945_v54  }
 0x56c   :  { %v1991_v5 = vadd.f32 %v1990_v1, %v1987_v63 }
 0x56e   :  { %2002 = vrot.lane.b32.xlu0 %v1996_v2, %s2745_s2  ;;  %1998 = vrot.lane.b32.xlu1 %v1995_v3, %s2746_s10  ;;  %v1994_v6 = vadd.f32 %v1993_v4, %v1991_v5 }
 0x5e1   :  { %v1955_v31 = vpop.permute.xlu0 %1954  ;;  %v1950_v32 = vpop.permute.xlu1 %1949 }
 0x5e2   :  { %v1968_v20 = vmul.f32 %v1955_v31, %v1848_v11  ;;  %v1975_v33 = vmul.f32 %v1955_v31, %v1859_v29  ;;  %v1967_v35 = vmul.f32 %v1950_v32, %v1842_v28  ;;  %v1974_v36 = vmul.f32 %v1950_v32, %v1851_v30 }
 0x5e4   :  { %v1976_v25 = vadd.f32 %v1975_v33, %v1974_v36  ;;  %v1969_v43 = vadd.f32 %v1968_v20, %v1967_v35 }
 0x5e5   :  { %v1965_v0 = vpop.permute.xlu0 %1964  ;;  %v1960_v40 = vpop.permute.xlu1 %1959 }
 0x5e6   :  { %v1970_v17 = vmul.f32 %v1960_v40, %v1845_v37  ;;  %v1977_v44 = vmul.f32 %v1960_v40, %v1856_v38  ;;  %v1972_v53 = vmul.f32 %v1965_v0, %v1843_v26  ;;  %v1979_v45 = vmul.f32 %v1965_v0, %v1853_v50 }
 0x5e8   :  { %v1971_v7 = vadd.f32 %v1970_v17, %v1969_v43  ;;  %v1978_v34 = vadd.f32 %v1977_v44, %v1976_v25 }
 0x5e9   :  { %v2003_v46 = vpop.permute.xlu0 %2002  ;;  %v1999_v47 = vpop.permute.xlu1 %1998 }
 0x5ea   :  { %v1973_v48 = vadd.f32 %v1972_v53, %v1971_v7  ;;  %v1980_v41 = vadd.f32 %v1979_v45, %v1978_v34  ;;  %v2006_v49 = vsel %vm2005_vm9, %v1994_v6, %v1999_v47 }
 0x5eb   :  { %v2008_v51 = vsel %vm2007_vm10, %v2006_v49, %v2003_v46 }
 0x5ec   :  { %2011 = vst [vmem:[#allocation8] sm:$0xff] %v1973_v48  ;;  %2012 = vst [vmem:[#allocation8 + $0x8] sm:$0xff] %v1980_v41  ;;  %v2010_v52 = vsel %vm2009_vm11, %v2008_v51, 0.0 }
 0x5ed   :  { %2013 = vst [vmem:[#allocation8 + $0x10] sm:$0xff] %v2010_v52 }
 0x5ee   :  { %2718 = shalt.err (!%p2715_p0)
}
 0x5ef   :  { %2023 = dma.vmem_to_hbm [thread:$0]  %s2021_s12, 384, %s2878_s4, [#allocation5]  }
 0x5f0   :  { %2731 = dma.done.wait [#allocation5], 384  }
 0x5f1   :  { %2732 = vsyncadd [#allocation5], 4294966912 }
 0x5f2   :  { %2027 = vsyncpa [#allocation4], 1 }
 0x5f3   :  { %2028 = vsyncpa [#allocation7], 1 }
 0x5f4   :  { %2029 = vsyncpa [#allocation5], 1 }

</bundles_post_ra>
